<compile_context>
chip_gen: v6e
topology: v6e:2x2x1
jax: 0.10.0
libtpu: 0.0.40
codegen_flags: <defaults>
</compile_context>

<pallas_src>
import jax
import jax.numpy as jnp
from jax.experimental import pallas as pl
from jax.experimental.pallas import tpu as pltpu

EPS = 1e-5  # nn.LayerNorm default eps

# Row layout of the packed per-channel parameter array (16, C).
ROW_BQ, ROW_BK, ROW_BV = 0, 1, 2
ROW_GQ, ROW_BETAQ = 3, 4
ROW_GK, ROW_BETAK = 5, 6
ROW_GV, ROW_BETAV = 7, 8
ROW_G1, ROW_BETA1 = 9, 10
ROW_G2, ROW_BETA2 = 11, 12
ROW_G3, ROW_BETA3 = 13, 14
ROW_B2 = 15
NUM_PROWS = 16


# ----------------------------------------------------------------------------
# Kernel factory: SlotsDynamicConv attention + residual + FFN + layernorms
# ----------------------------------------------------------------------------
def _make_kernel(has_qpos, has_pos, L, U, C, matmul_dtype):
    def kernel(*refs):
        it = iter(refs)
        mq_ref = next(it)                      # (Bg, L, C)
        feat_ref = next(it)                    # (Bg, U, C)
        qpos_ref = next(it) if has_qpos else None
        pos_ref = next(it) if has_pos else None
        wqkv_ref = next(it)                    # (C, 3C)  resident
        w1_ref = next(it)                      # (C, F)   resident
        b1_ref = next(it)                      # (1, F)   resident
        w2_ref = next(it)                      # (F, C)   resident
        pvec_ref = next(it)                    # (16, C)  resident
        out_ref = next(it)                     # (Bg, L, C)

        Bg = mq_ref.shape[0]
        pvec = pvec_ref[...]

        def row(i):                            # static (1, C) slice: free
            return pvec[i:i + 1, :]

        def layer_norm(x, gamma, beta):
            mu = jnp.mean(x, axis=-1, keepdims=True)
            xc = x - mu
            var = jnp.mean(xc * xc, axis=-1, keepdims=True)
            return xc * jax.lax.rsqrt(var + EPS) * gamma + beta

        cast = lambda a: a.astype(matmul_dtype)    # no-op when f32

        # Merge batch into the sublane axis (L, U multiples of 8 -> free).
        mq = mq_ref[...].reshape(Bg * L, C)
        feat = feat_ref[...].reshape(Bg * U, C)

        if has_qpos:
            curr = mq + qpos_ref[...].reshape(Bg * L, C)
        else:
            curr = mq
        if has_pos:
            k_in = feat + pos_ref[...].reshape(Bg * U, C)
        else:
            k_in = feat

        # --- SlotsDynamicConv: Q/K/V via 128-aligned lane slices of wqkv ----
        q = jnp.dot(cast(curr), cast(wqkv_ref[:, 0:C]),
                    preferred_element_type=jnp.float32) + row(ROW_BQ)
        k = jnp.dot(cast(k_in), cast(wqkv_ref[:, C:2 * C]),
                    preferred_element_type=jnp.float32) + row(ROW_BK)
        v = jnp.dot(cast(feat), cast(wqkv_ref[:, 2 * C:3 * C]),
                    preferred_element_type=jnp.float32) + row(ROW_BV)

        q = layer_norm(q, row(ROW_GQ), row(ROW_BETAQ)).reshape(Bg, L, C)
        k = layer_norm(k, row(ROW_GK), row(ROW_BETAK)).reshape(Bg, U, C)
        v = layer_norm(v, row(ROW_GV), row(ROW_BETAV)).reshape(Bg, U, C)

        # attn = einsum('blc,buc->blu'): contraction on both channel axes,
        # no explicit transpose.  Tiny matmul; accepted per review.
        attn = jnp.einsum('blc,buc->blu', cast(q), cast(k),
                          preferred_element_type=jnp.float32)       # (Bg, L, U)

        # softmax_dim == 'slots' -> softmax over the L (slots) axis = axis 1.
        attn = attn - jnp.max(attn, axis=1, keepdims=True)
        attn = jnp.exp(attn)
        attn = attn * pl.reciprocal(jnp.sum(attn, axis=1, keepdims=True),
                                    approx=False)                   # exact

        inter = jnp.einsum('blu,buc->blc', cast(attn), cast(v),
                           preferred_element_type=jnp.float32)      # (Bg, L, C)
        inter = layer_norm(inter.reshape(Bg * L, C), row(ROW_G1), row(ROW_BETA1))
        inter = jnp.maximum(inter, 0.0)                             # ReLU

        # --- residual + norm2 (dropout2 identity at eval) --------------------
        pro = mq + inter
        obj = layer_norm(pro, row(ROW_G2), row(ROW_BETA2))

        # --- FFN (dropout / dropout3 identity at eval) ------------------------
        h = jnp.dot(cast(obj), cast(w1_ref[...]),
                    preferred_element_type=jnp.float32) + b1_ref[...]
        h = jnp.maximum(h, 0.0)
        ffn = jnp.dot(cast(h), cast(w2_ref[...]),
                      preferred_element_type=jnp.float32) + row(ROW_B2)

        obj = obj + ffn
        out = layer_norm(obj, row(ROW_G3), row(ROW_BETA3))
        out_ref[...] = out.reshape(Bg, L, C).astype(out_ref.dtype)

    return kernel


# ----------------------------------------------------------------------------
# One-time parameter packing (call once per model, NOT per forward).
# ----------------------------------------------------------------------------
def pack_params(params, matmul_dtype=jnp.float32):
    f32 = lambda a: jnp.asarray(a, jnp.float32)
    wqkv = jnp.concatenate(
        [f32(params["wq"]), f32(params["wk"]), f32(params["wv"])],
        axis=1).astype(matmul_dtype)                                 # (C, 3C)
    pvec = jnp.stack([
        params["bq"], params["bk"], params["bv"],
        params["gq"], params["betaq"],
        params["gk"], params["betak"],
        params["gv"], params["betav"],
        params["g1"], params["beta1"],
        params["g2"], params["beta2"],
        params["g3"], params["beta3"],
        params["b2"],
    ], axis=0).astype(jnp.float32)                                   # (16, C)
    return {
        "wqkv": wqkv,
        "w1": f32(params["w1"]).astype(matmul_dtype),                # (C, F)
        "b1": f32(params["b1"]).reshape(1, -1),                      # (1, F) f32
        "w2": f32(params["w2"]).astype(matmul_dtype),                # (F, C)
        "pvec": pvec,
        "matmul_dtype": matmul_dtype,
    }


# ----------------------------------------------------------------------------
# Wrapper
# ----------------------------------------------------------------------------
def temporal_slots_head(features, mask_query, packed, pos=None, query_pos=None):
    """features: (U, C) or (B, U, C); mask_query: (L, C) or (B, L, C).
    `packed` is the dict returned by pack_params()."""
    squeeze_out = False
    if mask_query.ndim == 2:                   # module semantics: single instance
        mask_query, features = mask_query[None], features[None]
        if pos is not None:
            pos = pos[None]
        if query_pos is not None:
            query_pos = query_pos[None]
        squeeze_out = True

    mask_query = jnp.asarray(mask_query, jnp.float32)
    features = jnp.asarray(features, jnp.float32)

    B, L, C = mask_query.shape
    _, U, _ = features.shape
    F = packed["w1"].shape[1]

    # Layout guards: keep every slice / reshape (8,128)-tile aligned so
    # stores stay unmasked (lane-dense output) and reshapes stay free.
    assert C % 128 == 0, f"d_model must be a multiple of 128, got {C}"
    assert F % 128 == 0, f"dim_feedforward must be a multiple of 128, got {F}"
    assert L % 8 == 0 and U % 8 == 0, (
        f"nr_boxes ({L}) and prev_nr_boxes ({U}) must be multiples of 8")

    has_qpos = query_pos is not None
    has_pos = pos is not None

    # Fat grid steps amortize the ~0.35us/step overhead; keep 2 steps when
    # possible so the "parallel" axis can shard across v7x's two TensorCores.
    G = 2 if (B % 2 == 0 and B >= 2) else 1
    Bg = B // G

    kernel = _make_kernel(has_qpos, has_pos, L, U, C, packed["matmul_dtype"])

    act_spec_L = pl.BlockSpec((Bg, L, C), lambda g: (g, 0, 0))
    act_spec_U = pl.BlockSpec((Bg, U, C), lambda g: (g, 0, 0))
    resident = lambda shape: pl.BlockSpec(shape, lambda g, _s=shape: (0,) * len(_s))

    in_specs = [act_spec_L, act_spec_U]
    args = [mask_query, features]
    if has_qpos:
        in_specs.append(act_spec_L)
        args.append(jnp.asarray(query_pos, jnp.float32))
    if has_pos:
        in_specs.append(act_spec_U)
        args.append(jnp.asarray(pos, jnp.float32))
    in_specs += [resident(packed["wqkv"].shape),
                 resident(packed["w1"].shape),
                 resident(packed["b1"].shape),
                 resident(packed["w2"].shape),
                 resident(packed["pvec"].shape)]
    args += [packed["wqkv"], packed["w1"], packed["b1"], packed["w2"],
             packed["pvec"]]

    # Advisory scheduler hint so XLA overlaps neighbours with the kernel.
    flops = 2 * B * (L * C * C + 2 * U * C * C + 2 * L * U * C + 2 * L * C * F)
    transcendentals = B * (L * U + 3 * L + 2 * U)
    weight_bytes = sum(int(packed[n].size) * packed[n].dtype.itemsize
                       for n in ("wqkv", "w1", "b1", "w2", "pvec"))
    act_bytes = 4 * (B * L * C * (2 + int(has_qpos)) + B * U * C * (1 + int(has_pos)))
    cost = pl.CostEstimate(flops=flops, transcendentals=transcendentals,
                           bytes_accessed=weight_bytes + act_bytes)

    # VMEM budget: resident weights + double-buffered activation blocks +
    # rough headroom for intermediates.  Only raise the scoped limit if the
    # default (32 MiB) would be exceeded.
    est_vmem = (2 * weight_bytes + 2 * (act_bytes // G)
                + 2 * 4 * Bg * L * C + 8 * 4 * Bg * L * max(C, F))
    vmem_limit = None
    if est_vmem > 32 * 1024 * 1024:
        # TODO(synk): on v7x (64 MiB physical VMEM) K-tile the FFN matmuls /
        # hold weights in bf16 instead of only raising the scoped limit.
        vmem_limit = min(est_vmem, 96 * 1024 * 1024)

    out = pl.pallas_call(
        kernel,
        out_shape=jax.ShapeDtypeStruct((B, L, C), jnp.float32),
        grid=(G,),
        in_specs=in_specs,
        out_specs=pl.BlockSpec((Bg, L, C), lambda g: (g, 0, 0)),
        compiler_params=pltpu.CompilerParams(
            dimension_semantics=("parallel",),
            vmem_limit_bytes=vmem_limit),
        cost_estimate=cost,
    )(*args)

    return out[0] if squeeze_out else out


# ----------------------------------------------------------------------------
# Pure-JAX reference (mirrors the PyTorch forward) for correctness checking
# ----------------------------------------------------------------------------
def reference(features, mask_query, params, pos=None, query_pos=None):
    L, C = mask_query.shape
    U, _ = features.shape
    if pos is None:
        pos = jnp.zeros((U, C), jnp.float32)
    if query_pos is None:
        query_pos = jnp.zeros((L, C), jnp.float32)

    def ln(x, g, b):
        mu = jnp.mean(x, -1, keepdims=True)
        var = jnp.mean((x - mu) ** 2, -1, keepdims=True)
        return (x - mu) / jnp.sqrt(var + EPS) * g + b

    q = ln((mask_query + query_pos) @ params["wq"] + params["bq"],
           params["gq"], params["betaq"])
    k = ln((features + pos) @ params["wk"] + params["bk"],
           params["gk"], params["betak"])
    v = ln(features @ params["wv"] + params["bv"],
           params["gv"], params["betav"])
    attn = q @ k.T
    attn = jax.nn.softmax(attn, axis=0)        # softmax over slot (L) axis
    inter = jnp.maximum(ln(attn @ v, params["g1"], params["beta1"]), 0.0)
    pro = mask_query + inter
    obj = ln(pro, params["g2"], params["beta2"])
    ffn = jnp.maximum(obj @ params["w1"] + params["b1"], 0.0) @ params["w2"] + params["b2"]
    return ln(obj + ffn, params["g3"], params["beta3"])


# ----------------------------------------------------------------------------
def init_params(key, d_model, dim_feedforward):
    ks = jax.random.split(key, 8)
    s = 0.05
    p = {
        "wq": s * jax.random.normal(ks[0], (d_model, d_model), jnp.float32),
        "bq": s * jax.random.normal(ks[1], (d_model,), jnp.float32),
        "wk": s * jax.random.normal(ks[2], (d_model, d_model), jnp.float32),
        "bk": s * jax.random.normal(ks[3], (d_model,), jnp.float32),
        "wv": s * jax.random.normal(ks[4], (d_model, d_model), jnp.float32),
        "bv": s * jax.random.normal(ks[5], (d_model,), jnp.float32),
        "w1": s * jax.random.normal(ks[6], (d_model, dim_feedforward), jnp.float32),
        "b1": jnp.zeros((dim_feedforward,), jnp.float32),
        "w2": s * jax.random.normal(ks[7], (dim_feedforward, d_model), jnp.float32),
        "b2": jnp.zeros((d_model,), jnp.float32),
    }
    for name in ("q", "k", "v", "1", "2", "3"):   # LayerNorm affine params
        p["g" + name] = jnp.ones((d_model,), jnp.float32)
        p["beta" + name] = jnp.zeros((d_model,), jnp.float32)
    return p


if __name__ == "__main__":
    key = jax.random.PRNGKey(0)
    k_feat, k_mq, k_pos, k_qpos, k_par = jax.random.split(key, 5)

    B = 4                 # batch of independent head evaluations
    d_model = 128         # lane-dense channel dim
    dim_ff = 256          # dim_feedforward
    nr_boxes = 16         # current-frame slots (L)
    prev_nr_boxes = 8     # previous-frame slots (U)

    features = jax.random.normal(k_feat, (B, prev_nr_boxes, d_model), jnp.float32)
    mask_query = jax.random.normal(k_mq, (B, nr_boxes, d_model), jnp.float32)
    pos = jax.random.normal(k_pos, (B, prev_nr_boxes, d_model), jnp.float32)
    query_pos = jax.random.normal(k_qpos, (B, nr_boxes, d_model), jnp.float32)

    params = init_params(k_par, d_model, dim_ff)
    packed = pack_params(params)               # pack + cast once, outside hot path

    # Batched path: grid=(2,), B/2 instances per fat step ("parallel" axis
    # covers both v7x TensorCores; serial, near-free on v5e/v6e).
    out = temporal_slots_head(features, mask_query, packed,
                              pos=pos, query_pos=query_pos)
    out = jax.block_until_ready(out)

    ref = jax.vmap(lambda f, m, p, qp: reference(f, m, params, pos=p, query_pos=qp))(
        features, mask_query, pos, query_pos)
    assert out.shape == (B, nr_boxes, d_model)
    assert jnp.allclose(out, ref, atol=2e-3, rtol=2e-3), "batched mismatch vs reference"

    # Single-instance path (exact PyTorch module signature), no positional
    # embeddings: exercises the compile-time variant that drops pos/qpos DMAs.
    out1 = temporal_slots_head(features[0], mask_query[0], packed)
    out1 = jax.block_until_ready(out1)
    ref1 = reference(features[0], mask_query[0], params)
    assert out1.shape == (nr_boxes, d_model)
    assert jnp.allclose(out1, ref1, atol=2e-3, rtol=2e-3), "single mismatch vs reference"

    print("KERNEL_OK")
</pallas_src>

<mosaic_0001>
module attributes {stable_mosaic.version = 11 : i64} {
  func.func @kernel(%arg0: i32, %arg1: memref<2x16x128xf32, #tpu.memory_space<vmem>>, %arg2: memref<2x8x128xf32, #tpu.memory_space<vmem>>, %arg3: memref<2x16x128xf32, #tpu.memory_space<vmem>>, %arg4: memref<2x8x128xf32, #tpu.memory_space<vmem>>, %arg5: memref<128x384xf32, #tpu.memory_space<vmem>>, %arg6: memref<128x256xf32, #tpu.memory_space<vmem>>, %arg7: memref<1x256xf32, #tpu.memory_space<vmem>>, %arg8: memref<256x128xf32, #tpu.memory_space<vmem>>, %arg9: memref<16x128xf32, #tpu.memory_space<vmem>>, %arg10: memref<2x16x128xf32, #tpu.memory_space<vmem>>) attributes {dimension_semantics = [#tpu.dimension_semantics<parallel>], iteration_bounds = array<i64: 2>, scalar_prefetch = 0 : i64, scratch_operands = 0 : i64, tpu.core_type = #tpu.core_type<tc>, window_params = [{transform_indices = @transform_0, window_bounds = array<i64: 2, 16, 128>}, {transform_indices = @transform_1, window_bounds = array<i64: 2, 8, 128>}, {transform_indices = @transform_2, window_bounds = array<i64: 2, 16, 128>}, {transform_indices = @transform_3, window_bounds = array<i64: 2, 8, 128>}, {pipeline_mode = #tpu.pipeline_mode<synchronous>, transform_indices = @transform_4, window_bounds = array<i64: 128, 384>}, {pipeline_mode = #tpu.pipeline_mode<synchronous>, transform_indices = @transform_5, window_bounds = array<i64: 128, 256>}, {pipeline_mode = #tpu.pipeline_mode<synchronous>, transform_indices = @transform_6, window_bounds = array<i64: 1, 256>}, {pipeline_mode = #tpu.pipeline_mode<synchronous>, transform_indices = @transform_7, window_bounds = array<i64: 256, 128>}, {pipeline_mode = #tpu.pipeline_mode<synchronous>, transform_indices = @transform_8, window_bounds = array<i64: 16, 128>}, {transform_indices = @transform_9, window_bounds = array<i64: 2, 16, 128>}]} {
    %c0 = arith.constant 0 : index
    %c0_0 = arith.constant 0 : index
    %0 = vector.load %arg9[%c0, %c0_0] : memref<16x128xf32, #tpu.memory_space<vmem>>, vector<16x128xf32>
    %c0_1 = arith.constant 0 : index
    %c0_2 = arith.constant 0 : index
    %c0_3 = arith.constant 0 : index
    %1 = vector.load %arg1[%c0_1, %c0_2, %c0_3] : memref<2x16x128xf32, #tpu.memory_space<vmem>>, vector<2x16x128xf32>
    %2 = vector.shape_cast %1 : vector<2x16x128xf32> to vector<32x128xf32>
    %c0_4 = arith.constant 0 : index
    %c0_5 = arith.constant 0 : index
    %c0_6 = arith.constant 0 : index
    %3 = vector.load %arg2[%c0_4, %c0_5, %c0_6] : memref<2x8x128xf32, #tpu.memory_space<vmem>>, vector<2x8x128xf32>
    %4 = vector.shape_cast %3 : vector<2x8x128xf32> to vector<16x128xf32>
    %c0_7 = arith.constant 0 : index
    %c0_8 = arith.constant 0 : index
    %c0_9 = arith.constant 0 : index
    %5 = vector.load %arg3[%c0_7, %c0_8, %c0_9] : memref<2x16x128xf32, #tpu.memory_space<vmem>>, vector<2x16x128xf32>
    %6 = vector.shape_cast %5 : vector<2x16x128xf32> to vector<32x128xf32>
    %7 = arith.addf %2, %6 : vector<32x128xf32>
    %c0_10 = arith.constant 0 : index
    %c0_11 = arith.constant 0 : index
    %c0_12 = arith.constant 0 : index
    %8 = vector.load %arg4[%c0_10, %c0_11, %c0_12] : memref<2x8x128xf32, #tpu.memory_space<vmem>>, vector<2x8x128xf32>
    %9 = vector.shape_cast %8 : vector<2x8x128xf32> to vector<16x128xf32>
    %10 = arith.addf %4, %9 : vector<16x128xf32>
    %c0_13 = arith.constant 0 : index
    %c0_14 = arith.constant 0 : index
    %11 = vector.load %arg5[%c0_13, %c0_14] : memref<128x384xf32, #tpu.memory_space<vmem>>, vector<128x128xf32>
    %cst = arith.constant dense<0.000000e+00> : vector<32x128xf32>
    %12 = tpu.matmul %7, %11, %cst {dimension_numbers = #tpu.dot_dimension_numbers<[1], [0], [0], [1], [0, 0, 1, 1], [], []>} : vector<32x128xf32>, vector<128x128xf32>, vector<32x128xf32> -> vector<32x128xf32>
    %13 = vector.extract_strided_slice %0 {offsets = [0, 0], sizes = [1, 128], strides = [1, 1]} : vector<16x128xf32> to vector<1x128xf32>
    %14 = vector.broadcast %13 : vector<1x128xf32> to vector<32x128xf32>
    %15 = arith.addf %12, %14 : vector<32x128xf32>
    %c0_15 = arith.constant 0 : index
    %c128 = arith.constant 128 : index
    %16 = vector.load %arg5[%c0_15, %c128] : memref<128x384xf32, #tpu.memory_space<vmem>>, vector<128x128xf32>
    %cst_16 = arith.constant dense<0.000000e+00> : vector<16x128xf32>
    %17 = tpu.matmul %10, %16, %cst_16 {dimension_numbers = #tpu.dot_dimension_numbers<[1], [0], [0], [1], [0, 0, 1, 1], [], []>} : vector<16x128xf32>, vector<128x128xf32>, vector<16x128xf32> -> vector<16x128xf32>
    %18 = vector.extract_strided_slice %0 {offsets = [1, 0], sizes = [1, 128], strides = [1, 1]} : vector<16x128xf32> to vector<1x128xf32>
    %19 = vector.broadcast %18 : vector<1x128xf32> to vector<16x128xf32>
    %20 = arith.addf %17, %19 : vector<16x128xf32>
    %c0_17 = arith.constant 0 : index
    %c256 = arith.constant 256 : index
    %21 = vector.load %arg5[%c0_17, %c256] : memref<128x384xf32, #tpu.memory_space<vmem>>, vector<128x128xf32>
    %cst_18 = arith.constant dense<0.000000e+00> : vector<16x128xf32>
    %22 = tpu.matmul %4, %21, %cst_18 {dimension_numbers = #tpu.dot_dimension_numbers<[1], [0], [0], [1], [0, 0, 1, 1], [], []>} : vector<16x128xf32>, vector<128x128xf32>, vector<16x128xf32> -> vector<16x128xf32>
    %23 = vector.extract_strided_slice %0 {offsets = [2, 0], sizes = [1, 128], strides = [1, 1]} : vector<16x128xf32> to vector<1x128xf32>
    %24 = vector.broadcast %23 : vector<1x128xf32> to vector<16x128xf32>
    %25 = arith.addf %22, %24 : vector<16x128xf32>
    %26 = vector.extract_strided_slice %0 {offsets = [3, 0], sizes = [1, 128], strides = [1, 1]} : vector<16x128xf32> to vector<1x128xf32>
    %27 = vector.extract_strided_slice %0 {offsets = [4, 0], sizes = [1, 128], strides = [1, 1]} : vector<16x128xf32> to vector<1x128xf32>
    %cst_19 = arith.constant dense<0.000000e+00> : vector<32xf32>
    %28 = vector.multi_reduction <add>, %15, %cst_19 [1] : vector<32x128xf32> to vector<32xf32>
    %29 = vector.shape_cast %28 : vector<32xf32> to vector<32x1xf32>
    %cst_20 = arith.constant 1.280000e+02 : f32
    %30 = vector.broadcast %cst_20 : f32 to vector<32x1xf32>
    %31 = arith.divf %29, %30 : vector<32x1xf32>
    %32 = vector.broadcast %31 : vector<32x1xf32> to vector<32x128xf32>
    %33 = arith.subf %15, %32 : vector<32x128xf32>
    %34 = arith.mulf %33, %33 : vector<32x128xf32>
    %cst_21 = arith.constant dense<0.000000e+00> : vector<32xf32>
    %35 = vector.multi_reduction <add>, %34, %cst_21 [1] : vector<32x128xf32> to vector<32xf32>
    %36 = vector.shape_cast %35 : vector<32xf32> to vector<32x1xf32>
    %cst_22 = arith.constant 1.280000e+02 : f32
    %37 = vector.broadcast %cst_22 : f32 to vector<32x1xf32>
    %38 = arith.divf %36, %37 : vector<32x1xf32>
    %cst_23 = arith.constant 9.99999974E-6 : f32
    %39 = vector.broadcast %cst_23 : f32 to vector<32x1xf32>
    %40 = arith.addf %38, %39 : vector<32x1xf32>
    %41 = math.rsqrt %40 : vector<32x1xf32>
    %42 = vector.broadcast %41 : vector<32x1xf32> to vector<32x128xf32>
    %43 = arith.mulf %33, %42 : vector<32x128xf32>
    %44 = vector.broadcast %26 : vector<1x128xf32> to vector<32x128xf32>
    %45 = arith.mulf %43, %44 : vector<32x128xf32>
    %46 = vector.broadcast %27 : vector<1x128xf32> to vector<32x128xf32>
    %47 = arith.addf %45, %46 : vector<32x128xf32>
    %48 = vector.shape_cast %47 : vector<32x128xf32> to vector<2x16x128xf32>
    %49 = vector.extract_strided_slice %0 {offsets = [5, 0], sizes = [1, 128], strides = [1, 1]} : vector<16x128xf32> to vector<1x128xf32>
    %50 = vector.extract_strided_slice %0 {offsets = [6, 0], sizes = [1, 128], strides = [1, 1]} : vector<16x128xf32> to vector<1x128xf32>
    %cst_24 = arith.constant dense<0.000000e+00> : vector<16xf32>
    %51 = vector.multi_reduction <add>, %20, %cst_24 [1] : vector<16x128xf32> to vector<16xf32>
    %52 = vector.shape_cast %51 : vector<16xf32> to vector<16x1xf32>
    %cst_25 = arith.constant 1.280000e+02 : f32
    %53 = vector.broadcast %cst_25 : f32 to vector<16x1xf32>
    %54 = arith.divf %52, %53 : vector<16x1xf32>
    %55 = vector.broadcast %54 : vector<16x1xf32> to vector<16x128xf32>
    %56 = arith.subf %20, %55 : vector<16x128xf32>
    %57 = arith.mulf %56, %56 : vector<16x128xf32>
    %cst_26 = arith.constant dense<0.000000e+00> : vector<16xf32>
    %58 = vector.multi_reduction <add>, %57, %cst_26 [1] : vector<16x128xf32> to vector<16xf32>
    %59 = vector.shape_cast %58 : vector<16xf32> to vector<16x1xf32>
    %cst_27 = arith.constant 1.280000e+02 : f32
    %60 = vector.broadcast %cst_27 : f32 to vector<16x1xf32>
    %61 = arith.divf %59, %60 : vector<16x1xf32>
    %cst_28 = arith.constant 9.99999974E-6 : f32
    %62 = vector.broadcast %cst_28 : f32 to vector<16x1xf32>
    %63 = arith.addf %61, %62 : vector<16x1xf32>
    %64 = math.rsqrt %63 : vector<16x1xf32>
    %65 = vector.broadcast %64 : vector<16x1xf32> to vector<16x128xf32>
    %66 = arith.mulf %56, %65 : vector<16x128xf32>
    %67 = vector.broadcast %49 : vector<1x128xf32> to vector<16x128xf32>
    %68 = arith.mulf %66, %67 : vector<16x128xf32>
    %69 = vector.broadcast %50 : vector<1x128xf32> to vector<16x128xf32>
    %70 = arith.addf %68, %69 : vector<16x128xf32>
    %71 = vector.shape_cast %70 : vector<16x128xf32> to vector<2x8x128xf32>
    %72 = vector.extract_strided_slice %0 {offsets = [7, 0], sizes = [1, 128], strides = [1, 1]} : vector<16x128xf32> to vector<1x128xf32>
    %73 = vector.extract_strided_slice %0 {offsets = [8, 0], sizes = [1, 128], strides = [1, 1]} : vector<16x128xf32> to vector<1x128xf32>
    %cst_29 = arith.constant dense<0.000000e+00> : vector<16xf32>
    %74 = vector.multi_reduction <add>, %25, %cst_29 [1] : vector<16x128xf32> to vector<16xf32>
    %75 = vector.shape_cast %74 : vector<16xf32> to vector<16x1xf32>
    %cst_30 = arith.constant 1.280000e+02 : f32
    %76 = vector.broadcast %cst_30 : f32 to vector<16x1xf32>
    %77 = arith.divf %75, %76 : vector<16x1xf32>
    %78 = vector.broadcast %77 : vector<16x1xf32> to vector<16x128xf32>
    %79 = arith.subf %25, %78 : vector<16x128xf32>
    %80 = arith.mulf %79, %79 : vector<16x128xf32>
    %cst_31 = arith.constant dense<0.000000e+00> : vector<16xf32>
    %81 = vector.multi_reduction <add>, %80, %cst_31 [1] : vector<16x128xf32> to vector<16xf32>
    %82 = vector.shape_cast %81 : vector<16xf32> to vector<16x1xf32>
    %cst_32 = arith.constant 1.280000e+02 : f32
    %83 = vector.broadcast %cst_32 : f32 to vector<16x1xf32>
    %84 = arith.divf %82, %83 : vector<16x1xf32>
    %cst_33 = arith.constant 9.99999974E-6 : f32
    %85 = vector.broadcast %cst_33 : f32 to vector<16x1xf32>
    %86 = arith.addf %84, %85 : vector<16x1xf32>
    %87 = math.rsqrt %86 : vector<16x1xf32>
    %88 = vector.broadcast %87 : vector<16x1xf32> to vector<16x128xf32>
    %89 = arith.mulf %79, %88 : vector<16x128xf32>
    %90 = vector.broadcast %72 : vector<1x128xf32> to vector<16x128xf32>
    %91 = arith.mulf %89, %90 : vector<16x128xf32>
    %92 = vector.broadcast %73 : vector<1x128xf32> to vector<16x128xf32>
    %93 = arith.addf %91, %92 : vector<16x128xf32>
    %94 = vector.shape_cast %93 : vector<16x128xf32> to vector<2x8x128xf32>
    "tpu.trace_start"() <{level = 10 : i32, message = "blc,buc->blu"}> : () -> ()
    %cst_34 = arith.constant dense<0.000000e+00> : vector<2x16x8xf32>
    %95 = tpu.matmul %48, %71, %cst_34 {dimension_numbers = #tpu.dot_dimension_numbers<[2], [2], [1], [1], [0, 0, 0, 1, 1, 1], [0], [0]>} : vector<2x16x128xf32>, vector<2x8x128xf32>, vector<2x16x8xf32> -> vector<2x16x8xf32>
    "tpu.trace_stop"() : () -> ()
    %cst_35 = arith.constant dense<0xFF800000> : vector<2x8xf32>
    %96 = vector.multi_reduction <maximumf>, %95, %cst_35 [1] : vector<2x16x8xf32> to vector<2x8xf32>
    %97 = vector.shape_cast %96 : vector<2x8xf32> to vector<2x1x8xf32>
    %98 = vector.broadcast %97 : vector<2x1x8xf32> to vector<2x16x8xf32>
    %99 = arith.subf %95, %98 : vector<2x16x8xf32>
    %100 = math.exp %99 : vector<2x16x8xf32>
    %cst_36 = arith.constant dense<0.000000e+00> : vector<2x8xf32>
    %101 = vector.multi_reduction <add>, %100, %cst_36 [1] : vector<2x16x8xf32> to vector<2x8xf32>
    %102 = vector.shape_cast %101 : vector<2x8xf32> to vector<2x1x8xf32>
    %103 = tpu.reciprocal %102 : vector<2x1x8xf32> -> vector<2x1x8xf32>
    %104 = vector.broadcast %103 : vector<2x1x8xf32> to vector<2x16x8xf32>
    %105 = arith.mulf %100, %104 : vector<2x16x8xf32>
    "tpu.trace_start"() <{level = 10 : i32, message = "blu,buc->blc"}> : () -> ()
    %cst_37 = arith.constant dense<0.000000e+00> : vector<2x16x128xf32>
    %106 = tpu.matmul %105, %94, %cst_37 {dimension_numbers = #tpu.dot_dimension_numbers<[2], [1], [1], [2], [0, 0, 0, 1, 1, 2], [0], [0]>} : vector<2x16x8xf32>, vector<2x8x128xf32>, vector<2x16x128xf32> -> vector<2x16x128xf32>
    "tpu.trace_stop"() : () -> ()
    %107 = vector.shape_cast %106 : vector<2x16x128xf32> to vector<32x128xf32>
    %108 = vector.extract_strided_slice %0 {offsets = [9, 0], sizes = [1, 128], strides = [1, 1]} : vector<16x128xf32> to vector<1x128xf32>
    %109 = vector.extract_strided_slice %0 {offsets = [10, 0], sizes = [1, 128], strides = [1, 1]} : vector<16x128xf32> to vector<1x128xf32>
    %cst_38 = arith.constant dense<0.000000e+00> : vector<32xf32>
    %110 = vector.multi_reduction <add>, %107, %cst_38 [1] : vector<32x128xf32> to vector<32xf32>
    %111 = vector.shape_cast %110 : vector<32xf32> to vector<32x1xf32>
    %cst_39 = arith.constant 1.280000e+02 : f32
    %112 = vector.broadcast %cst_39 : f32 to vector<32x1xf32>
    %113 = arith.divf %111, %112 : vector<32x1xf32>
    %114 = vector.broadcast %113 : vector<32x1xf32> to vector<32x128xf32>
    %115 = arith.subf %107, %114 : vector<32x128xf32>
    %116 = arith.mulf %115, %115 : vector<32x128xf32>
    %cst_40 = arith.constant dense<0.000000e+00> : vector<32xf32>
    %117 = vector.multi_reduction <add>, %116, %cst_40 [1] : vector<32x128xf32> to vector<32xf32>
    %118 = vector.shape_cast %117 : vector<32xf32> to vector<32x1xf32>
    %cst_41 = arith.constant 1.280000e+02 : f32
    %119 = vector.broadcast %cst_41 : f32 to vector<32x1xf32>
    %120 = arith.divf %118, %119 : vector<32x1xf32>
    %cst_42 = arith.constant 9.99999974E-6 : f32
    %121 = vector.broadcast %cst_42 : f32 to vector<32x1xf32>
    %122 = arith.addf %120, %121 : vector<32x1xf32>
    %123 = math.rsqrt %122 : vector<32x1xf32>
    %124 = vector.broadcast %123 : vector<32x1xf32> to vector<32x128xf32>
    %125 = arith.mulf %115, %124 : vector<32x128xf32>
    %126 = vector.broadcast %108 : vector<1x128xf32> to vector<32x128xf32>
    %127 = arith.mulf %125, %126 : vector<32x128xf32>
    %128 = vector.broadcast %109 : vector<1x128xf32> to vector<32x128xf32>
    %129 = arith.addf %127, %128 : vector<32x128xf32>
    %cst_43 = arith.constant 0.000000e+00 : f32
    %130 = vector.broadcast %cst_43 : f32 to vector<32x128xf32>
    %131 = arith.maximumf %129, %130 : vector<32x128xf32>
    %132 = arith.addf %2, %131 : vector<32x128xf32>
    %133 = vector.extract_strided_slice %0 {offsets = [11, 0], sizes = [1, 128], strides = [1, 1]} : vector<16x128xf32> to vector<1x128xf32>
    %134 = vector.extract_strided_slice %0 {offsets = [12, 0], sizes = [1, 128], strides = [1, 1]} : vector<16x128xf32> to vector<1x128xf32>
    %cst_44 = arith.constant dense<0.000000e+00> : vector<32xf32>
    %135 = vector.multi_reduction <add>, %132, %cst_44 [1] : vector<32x128xf32> to vector<32xf32>
    %136 = vector.shape_cast %135 : vector<32xf32> to vector<32x1xf32>
    %cst_45 = arith.constant 1.280000e+02 : f32
    %137 = vector.broadcast %cst_45 : f32 to vector<32x1xf32>
    %138 = arith.divf %136, %137 : vector<32x1xf32>
    %139 = vector.broadcast %138 : vector<32x1xf32> to vector<32x128xf32>
    %140 = arith.subf %132, %139 : vector<32x128xf32>
    %141 = arith.mulf %140, %140 : vector<32x128xf32>
    %cst_46 = arith.constant dense<0.000000e+00> : vector<32xf32>
    %142 = vector.multi_reduction <add>, %141, %cst_46 [1] : vector<32x128xf32> to vector<32xf32>
    %143 = vector.shape_cast %142 : vector<32xf32> to vector<32x1xf32>
    %cst_47 = arith.constant 1.280000e+02 : f32
    %144 = vector.broadcast %cst_47 : f32 to vector<32x1xf32>
    %145 = arith.divf %143, %144 : vector<32x1xf32>
    %cst_48 = arith.constant 9.99999974E-6 : f32
    %146 = vector.broadcast %cst_48 : f32 to vector<32x1xf32>
    %147 = arith.addf %145, %146 : vector<32x1xf32>
    %148 = math.rsqrt %147 : vector<32x1xf32>
    %149 = vector.broadcast %148 : vector<32x1xf32> to vector<32x128xf32>
    %150 = arith.mulf %140, %149 : vector<32x128xf32>
    %151 = vector.broadcast %133 : vector<1x128xf32> to vector<32x128xf32>
    %152 = arith.mulf %150, %151 : vector<32x128xf32>
    %153 = vector.broadcast %134 : vector<1x128xf32> to vector<32x128xf32>
    %154 = arith.addf %152, %153 : vector<32x128xf32>
    %c0_49 = arith.constant 0 : index
    %c0_50 = arith.constant 0 : index
    %155 = vector.load %arg6[%c0_49, %c0_50] : memref<128x256xf32, #tpu.memory_space<vmem>>, vector<128x256xf32>
    %cst_51 = arith.constant dense<0.000000e+00> : vector<32x256xf32>
    %156 = tpu.matmul %154, %155, %cst_51 {dimension_numbers = #tpu.dot_dimension_numbers<[1], [0], [0], [1], [0, 0, 1, 1], [], []>} : vector<32x128xf32>, vector<128x256xf32>, vector<32x256xf32> -> vector<32x256xf32>
    %c0_52 = arith.constant 0 : index
    %c0_53 = arith.constant 0 : index
    %157 = vector.load %arg7[%c0_52, %c0_53] : memref<1x256xf32, #tpu.memory_space<vmem>>, vector<1x256xf32>
    %158 = vector.broadcast %157 : vector<1x256xf32> to vector<32x256xf32>
    %159 = arith.addf %156, %158 : vector<32x256xf32>
    %cst_54 = arith.constant 0.000000e+00 : f32
    %160 = vector.broadcast %cst_54 : f32 to vector<32x256xf32>
    %161 = arith.maximumf %159, %160 : vector<32x256xf32>
    %c0_55 = arith.constant 0 : index
    %c0_56 = arith.constant 0 : index
    %162 = vector.load %arg8[%c0_55, %c0_56] : memref<256x128xf32, #tpu.memory_space<vmem>>, vector<256x128xf32>
    %cst_57 = arith.constant dense<0.000000e+00> : vector<32x128xf32>
    %163 = tpu.matmul %161, %162, %cst_57 {dimension_numbers = #tpu.dot_dimension_numbers<[1], [0], [0], [1], [0, 0, 1, 1], [], []>} : vector<32x256xf32>, vector<256x128xf32>, vector<32x128xf32> -> vector<32x128xf32>
    %164 = vector.extract_strided_slice %0 {offsets = [15, 0], sizes = [1, 128], strides = [1, 1]} : vector<16x128xf32> to vector<1x128xf32>
    %165 = vector.broadcast %164 : vector<1x128xf32> to vector<32x128xf32>
    %166 = arith.addf %163, %165 : vector<32x128xf32>
    %167 = arith.addf %154, %166 : vector<32x128xf32>
    %168 = vector.extract_strided_slice %0 {offsets = [13, 0], sizes = [1, 128], strides = [1, 1]} : vector<16x128xf32> to vector<1x128xf32>
    %169 = vector.extract_strided_slice %0 {offsets = [14, 0], sizes = [1, 128], strides = [1, 1]} : vector<16x128xf32> to vector<1x128xf32>
    %cst_58 = arith.constant dense<0.000000e+00> : vector<32xf32>
    %170 = vector.multi_reduction <add>, %167, %cst_58 [1] : vector<32x128xf32> to vector<32xf32>
    %171 = vector.shape_cast %170 : vector<32xf32> to vector<32x1xf32>
    %cst_59 = arith.constant 1.280000e+02 : f32
    %172 = vector.broadcast %cst_59 : f32 to vector<32x1xf32>
    %173 = arith.divf %171, %172 : vector<32x1xf32>
    %174 = vector.broadcast %173 : vector<32x1xf32> to vector<32x128xf32>
    %175 = arith.subf %167, %174 : vector<32x128xf32>
    %176 = arith.mulf %175, %175 : vector<32x128xf32>
    %cst_60 = arith.constant dense<0.000000e+00> : vector<32xf32>
    %177 = vector.multi_reduction <add>, %176, %cst_60 [1] : vector<32x128xf32> to vector<32xf32>
    %178 = vector.shape_cast %177 : vector<32xf32> to vector<32x1xf32>
    %cst_61 = arith.constant 1.280000e+02 : f32
    %179 = vector.broadcast %cst_61 : f32 to vector<32x1xf32>
    %180 = arith.divf %178, %179 : vector<32x1xf32>
    %cst_62 = arith.constant 9.99999974E-6 : f32
    %181 = vector.broadcast %cst_62 : f32 to vector<32x1xf32>
    %182 = arith.addf %180, %181 : vector<32x1xf32>
    %183 = math.rsqrt %182 : vector<32x1xf32>
    %184 = vector.broadcast %183 : vector<32x1xf32> to vector<32x128xf32>
    %185 = arith.mulf %175, %184 : vector<32x128xf32>
    %186 = vector.broadcast %168 : vector<1x128xf32> to vector<32x128xf32>
    %187 = arith.mulf %185, %186 : vector<32x128xf32>
    %188 = vector.broadcast %169 : vector<1x128xf32> to vector<32x128xf32>
    %189 = arith.addf %187, %188 : vector<32x128xf32>
    %190 = vector.shape_cast %189 : vector<32x128xf32> to vector<2x16x128xf32>
    %c0_63 = arith.constant 0 : index
    %c0_64 = arith.constant 0 : index
    %c0_65 = arith.constant 0 : index
    %191 = vector.load %arg10[%c0_63, %c0_64, %c0_65] : memref<2x16x128xf32, #tpu.memory_space<vmem>>, vector<2x16x128xf32>
    tpu.vector_store %arg10[%c0_63, %c0_64, %c0_65], %190 {strides = array<i32>} : memref<2x16x128xf32, #tpu.memory_space<vmem>>, vector<2x16x128xf32>,
    return
  }
  func.func @transform_0(%arg0: i32) -> (i32, i32, i32) {
    %c0_i32 = arith.constant 0 : i32
    %c0_i32_0 = arith.constant 0 : i32
    %c0_i32_1 = arith.constant 0 : i32
    return %arg0, %c0_i32, %c0_i32_0 : i32, i32, i32
  }
  func.func @transform_1(%arg0: i32) -> (i32, i32, i32) {
    %c0_i32 = arith.constant 0 : i32
    %c0_i32_0 = arith.constant 0 : i32
    %c0_i32_1 = arith.constant 0 : i32
    return %arg0, %c0_i32, %c0_i32_0 : i32, i32, i32
  }
  func.func @transform_2(%arg0: i32) -> (i32, i32, i32) {
    %c0_i32 = arith.constant 0 : i32
    %c0_i32_0 = arith.constant 0 : i32
    %c0_i32_1 = arith.constant 0 : i32
    return %arg0, %c0_i32, %c0_i32_0 : i32, i32, i32
  }
  func.func @transform_3(%arg0: i32) -> (i32, i32, i32) {
    %c0_i32 = arith.constant 0 : i32
    %c0_i32_0 = arith.constant 0 : i32
    %c0_i32_1 = arith.constant 0 : i32
    return %arg0, %c0_i32, %c0_i32_0 : i32, i32, i32
  }
  func.func @transform_4(%arg0: i32) -> (i32, i32) {
    %c0_i32 = arith.constant 0 : i32
    %c0_i32_0 = arith.constant 0 : i32
    %c0_i32_1 = arith.constant 0 : i32
    return %c0_i32, %c0_i32_0 : i32, i32
  }
  func.func @transform_5(%arg0: i32) -> (i32, i32) {
    %c0_i32 = arith.constant 0 : i32
    %c0_i32_0 = arith.constant 0 : i32
    %c0_i32_1 = arith.constant 0 : i32
    return %c0_i32, %c0_i32_0 : i32, i32
  }
  func.func @transform_6(%arg0: i32) -> (i32, i32) {
    %c0_i32 = arith.constant 0 : i32
    %c0_i32_0 = arith.constant 0 : i32
    %c0_i32_1 = arith.constant 0 : i32
    return %c0_i32, %c0_i32_0 : i32, i32
  }
  func.func @transform_7(%arg0: i32) -> (i32, i32) {
    %c0_i32 = arith.constant 0 : i32
    %c0_i32_0 = arith.constant 0 : i32
    %c0_i32_1 = arith.constant 0 : i32
    return %c0_i32, %c0_i32_0 : i32, i32
  }
  func.func @transform_8(%arg0: i32) -> (i32, i32) {
    %c0_i32 = arith.constant 0 : i32
    %c0_i32_0 = arith.constant 0 : i32
    %c0_i32_1 = arith.constant 0 : i32
    return %c0_i32, %c0_i32_0 : i32, i32
  }
  func.func @transform_9(%arg0: i32) -> (i32, i32, i32) {
    %c0_i32 = arith.constant 0 : i32
    %c0_i32_0 = arith.constant 0 : i32
    %c0_i32_1 = arith.constant 0 : i32
    return %arg0, %c0_i32, %c0_i32_0 : i32, i32, i32
  }
}

</mosaic_0001>

<bundles_post_ra>
// kernel: tpu_custom_call.1
= control target key start
LH: loop header
LB: loop body
LE: loop exit
PB: predicated region body
PF: predicated region fallthrough
CT: control target
= control target key end

     0   :  { %s3366_s0 = inlined_call_operand.hbm [shape: f32[4,16,128], index: 0, kind: input, shape index: {}]   ;;  %s3367_s1 = inlined_call_operand.hbm [shape: f32[4,8,128], index: 1, kind: input, shape index: {}]   ;;  %s3368_s2 = inlined_call_operand.hbm [shape: f32[4,16,128], index: 2, kind: input, shape index: {}]   ;;  %s3369_s3 = inlined_call_operand.hbm [shape: f32[4,8,128], index: 3, kind: input, shape index: {}]   ;;  %s3370_s4 = inlined_call_operand.hbm [shape: f32[128,384], index: 4, kind: input, shape index: {}]   ;;  %s3371_s5 = inlined_call_operand.hbm [shape: f32[128,256], index: 5, kind: input, shape index: {}]   ;;  %s3372_s6 = inlined_call_operand.vmem [shape: f32[1,256], index: 6, kind: input, shape index: {}]   ;;  %s3373_s7 = inlined_call_operand.hbm [shape: f32[256,128], index: 7, kind: input, shape index: {}]   ;;  %s3374_s8 = inlined_call_operand.hbm [shape: f32[16,128], index: 8, kind: input, shape index: {}]   ;;  %s3375_s9 = inlined_call_operand.hbm [shape: f32[4,16,128], index: 9, kind: output, shape index: {}]  }
   0x1   :  { %3397 = sst [smem:[#allocation30_spill]] %s3366_s0 }
   0x2   :  { %3398 = sst [smem:[#allocation31_spill]] %s3367_s1 }
   0x3   :  { %3399 = sst [smem:[#allocation32_spill]] %s3370_s4 }
   0x4   :  { %3400 = sst [smem:[#allocation33_spill]] %s3371_s5 }
   0x5   :  { %3401 = sst [smem:[#allocation34_spill]] %s3372_s6 }
   0x6   :  { %3402 = sst [smem:[#allocation35_spill]] %s3375_s9 }
   0x7   :  { %14 = vsyncpa [#allocation3], 0 }
   0x8   :  { %16 = vsyncpa [#allocation3 + $0x1], 0 }
   0x9   :  { %17 = vsyncpa [#allocation6], 0 }
   0xa   :  { %19 = vsyncpa [#allocation6 + $0x1], 0 }
   0xb   :  { %20 = vsyncpa [#allocation9], 0 }
   0xc   :  { %22 = vsyncpa [#allocation9 + $0x1], 0 }
   0xd   :  { %23 = vsyncpa [#allocation12], 0 }
   0xe   :  { %24 = vsyncpa [#allocation15], 0 }
   0xf   :  { %25 = vsyncpa [#allocation4], 0 }
  0x10   :  { %27 = vsyncpa [#allocation4 + $0x1], 0  ;;  %s2816_s30 = smov 0   ;;  %s2818_s10 = smov 0  }
  0x11   :  { %s2820_s11 = smov 0   ;;  %s2822_s12 = smov 0  }
  0x12 LB: > { %3403 = sst [smem:[#allocation24_spill]] %s2734_s30  ;;  %s2837_s13 = sadd.s32 4294967295, %s2746_s12   ;;  %s2746_s12 = sphi %s2822_s12, %s3446_s12   ;;  %s2742_s11 = sphi %s2820_s11, %s3448_s11   ;;  %s2738_s10 = sphi %s2818_s10, %s3450_s10   ;;  %s2734_s30 = sphi %s2816_s30, %s3449_s30  }
  0x13   : > { %3404 = sst [smem:[#allocation25_spill]] %s2742_s11  ;;  %s1994_s14 = sadd.s32 4294967294, %s2746_s12  }
  0x14   : > { %p53_p0 = scmp.ne.s32.totalorder %s2738_s10, %s2734_s30  ;;  %p3376_p1 = scmp.eq.s32.totalorder %s2837_s13, 0 }
  0x15   : > { %p266_p3 = scmp.eq.s32.totalorder %s1994_s14, 1  ;;  %p1995_p5 = scmp.ge.s32.totalorder %s2746_s12, 1 }
  0x16   : > { %p2846_p4 = por %p3376_p1, %p53_p0  ;;  %p273_p7 = scmp.lt.s32.totalorder %s2746_s12, 3 }
  0x17   : > { %p2851_p6 = por %p266_p3, %p53_p0  ;;  %s2748_s18 = smov [#allocation10]  }
  0x18   : > { %s3405_s15 = scalar_select %p2846_p4, 1, 0 }
  0x19   : > { %s3406_s16 = scalar_select %p2851_p6, 1, 0 }
  0x1a   : > { %p2856_p8 = pnand %p1995_p5, %p273_p7  ;;  %s285_s19 = sshll.u32 %s2748_s18, 4  ;;  %s286_s19 = int_to_ptr.vmem [resolvable:$true] %s285_s19 }
  0x1b   : > { %3407 = sst [smem:[#allocation26_spill]] %s3406_s16  ;;  %s2749_s21 = smov [#allocation11]  }
  0x1c   : > { %s3408_s17 = scalar_select %p2856_p8, 1, 0 }
  0x1d   : > { %p2309_p9 = pneg %p2856_p8  ;;  %s298_s22 = sshll.u32 %s2749_s21, 4  ;;  %s299_s22 = int_to_ptr.vmem [resolvable:$true] %s298_s22 }
  0x1e   : > { %s2457_s23 = scalar_lea.vmem %s286_s19, 6144  ;;  %p2465_p5 = scmp.lt.s32.totalorder %s286_s19, %s286_s19 }
  0x1f   : > { %p2865_p11 = pnand %p2309_p9, %p3376_p1  ;;  %p2458_p13 = scmp.ne.s32.totalorder %s286_s19, %s2457_s23 }
  0x20   : > { %p2466_p7 = scmp.lt.s32.totalorder %s2457_s23, %s2457_s23 }
  0x21   : > { %s3409_s20 = scalar_select %p2865_p11, 1, 0 }
  0x22   : > { %p3381_p12 = pneg %p2865_p11  ;;  %p2467_p10 = por %p2466_p7, %p2465_p5 }
  0x24   : > { %p2460_p0 = pnand %p2458_p13, %p3381_p12 }
  0x26   : > { %p2461_p3 = pneg %p2460_p0 }
  0x28   : > { %p2468_p9 = pnand %p2467_p10, %p2461_p3 }
  0x2a   : > { %2471 = shalt.err (!%p2468_p9)
}
  0x2b   : > { %s2750_s24 = smov 384   ;;  %s2751_s25 = smov 24  }
  0x2c   : > { %s3410_s4 = sld [smem:[#allocation32_spill]]  ;;  %s2483_s28 = scalar_lea.vmem %s299_s22, 4096 }
  0x2d   : > { %p2484_p1 = scmp.ne.s32.totalorder %s299_s22, %s2483_s28  ;;  %p2491_p2 = scmp.lt.s32.totalorder %s299_s22, %s299_s22 }
  0x2e   : > { %p2492_p6 = scmp.lt.s32.totalorder %s2483_s28, %s2483_s28 }
  0x2f   : > { %p2486_p13 = pnand %p2484_p1, %p3381_p12 }
  0x30   : > { %p2493_p5 = por %p2492_p6, %p2491_p2 }
  0x31   : > { %p2487_p0 = pneg %p2486_p13 }
  0x32   : > { %2312 = dma.hbm_to_vmem [thread:$0]  (!%p2865_p11), %s3410_s4, 6144, %s286_s19, [#allocation9], %s2750_s24, %s2750_s24, %s2751_s25  }
  0x33   : > { %p2494_p10 = pnand %p2493_p5, %p2487_p0 }
  0x35   : > { %2497 = shalt.err (!%p2494_p10)
}
  0x36   : > { %s2752_s29 = smov 256   ;;  %s2753_s14 = smov 16  }
  0x37   : > { %s3411_s5 = sld [smem:[#allocation33_spill]]  ;;  %s2888_s21 = sadd.s32 1, %s2746_s12  }
  0x38   : > { %3412 = sst [smem:[#allocation27_spill]] %s2888_s21  ;;  %s37_s23 = ssub.s32 %s2746_s12, %s2888_s21 }
  0x39   : > { %p38_p1 = scmp.eq.s32.totalorder %s37_s23, 0  ;;  %s40_s24 = sadd.s32 1, %s2742_s11 }
  0x3a   : > { %p47_p2 = scmp.ne.s32.totalorder %s2742_s11, %s2738_s10  ;;  %p48_p6 = scmp.eq.s32.totalorder %s2746_s12, 0 }
  0x3b   : > { %s2897_s25 = scalar_select %p38_p1, %s2742_s11, %s40_s24  }
  0x3c   : > { %p49_p3 = por %p48_p6, %p47_p2  ;;  %p3414_p7 = scmp.eq.s32.totalorder %s2837_s13, 1 }
  0x3d   : > { %2315 = dma.hbm_to_vmem [thread:$0]  (!%p2865_p11), %s3411_s5, 4096, %s299_s22, [#allocation12], %s2752_s29, %s2752_s29, %s2753_s14  }
  0x3e   : > { %3413 = sst [smem:[#allocation28_spill]] %s2897_s25  ;;  %p2901_p9 = por %p3414_p7, %p47_p2 }
  0x3f   : > { %p2343_p13 = scmp.lt.s32.totalorder %s2746_s12, 2  ;;  %s2907_s22 = sand.u32 1, %s2742_s11  }
  0x40   : > { %s3415_s26 = scalar_select %p2901_p9, 1, 0 }
  0x41   : > { %s3380_s27 = sand.u32 1, %s2746_s12   ;;  %s3378_s28 = sshll.u32 %s2907_s22, 4 }
  0x42   : > { %3416 = sst [smem:[#allocation29_spill]] %s3415_s26  ;;  %p2911_p0 = pnand %p2343_p13, %p49_p3 }
  0x43   : > { %s3379_s14 = sshll.u32 %s2746_s12, 8  ;;  %s3418_s1 = sld [smem:[#allocation31_spill]] }
  0x44   : > { %s367_s24 = scalar_lea.vmem [#allocation5], %s3378_s28  ;;  %s2929_s5 = scalar_lea.sflag [#allocation6], %s3380_s27 }
  0x45   : > { %s374_s4 = sshll.u32 %s367_s24, 4  ;;  %p2935_p10 = pneg %p2911_p0  ;;  %s2925_s4 = int_to_ptr.vmem [resolvable:$true] %s374_s4 }
  0x49   : > { %s2921_s23 = scalar_lea.hbm %s3418_s1, %s3379_s14  ;;  %s2503_s24 = scalar_lea.hbm %s3418_s1, 512 }
  0x4a   : > { %s2498_s25 = scalar_lea.hbm %s2921_s23, 256  ;;  %p2504_p6 = scmp.lt.s32.totalorder %s2921_s23, %s3418_s1 }
  0x4b   : > { %p2499_p5 = scmp.ne.s32.totalorder %s2921_s23, %s2498_s25  ;;  %p2505_p3 = scmp.lt.s32.totalorder %s2503_s24, %s2498_s25 }
  0x4d   : > { %p2501_p1 = pnand %p2935_p10, %p2499_p5  ;;  %p2506_p7 = por %p2505_p3, %p2504_p6 }
  0x4f   : > { %p2502_p2 = pneg %p2501_p1 }
  0x51   : > { %p2507_p13 = pnand %p2506_p7, %p2502_p2 }
  0x53   : > { %2510 = shalt.err (!%p2507_p13)
}
  0x54   : > { %s2511_s27 = scalar_lea.vmem %s2925_s4, 256  ;;  %s2754_s21 = smov [#allocation5]  }
  0x55   : > { %p2512_p12 = scmp.ne.s32.totalorder %s2925_s4, %s2511_s27  ;;  %s2516_s18 = sshll.u32 %s2754_s21, 4  ;;  %s2517_s18 = int_to_ptr.vmem [resolvable:$false] %s2516_s18 }
  0x56   : > { %s2518_s19 = scalar_lea.vmem %s2517_s18, 512  ;;  %p2519_p9 = scmp.lt.s32.totalorder %s2925_s4, %s2517_s18 }
  0x57   : > { %p2514_p5 = pnand %p2512_p12, %p2935_p10  ;;  %p2520_p4 = scmp.lt.s32.totalorder %s2518_s19, %s2511_s27 }
  0x59   : > { %p2515_p1 = pneg %p2514_p5  ;;  %p2521_p8 = por %p2520_p4, %p2519_p9 }
  0x5b   : > { %p2522_p11 = pnand %p2521_p8, %p2515_p1 }
  0x5d   : > { %2525 = shalt.err (!%p2522_p11)
}
  0x5e   : > { %s3394_s25 = smov 128   ;;  %s2756_s28 = smov 8  }
  0x5f   : > { %2328 = dma.hbm_to_vmem [thread:$0]  (!%p2911_p0), %s2921_s23, 256, %s2925_s4, %s2929_s5, %s3394_s25, %s3394_s25, %s2756_s28  }
  0x60   : > { %s3420_s21 = sshll.u32 %s2746_s12, 8  ;;  %s3421_s18 = sshll.u32 %s2907_s22, 4 }
  0x61   : > { %s2966_s24 = scalar_lea.hbm %s3369_s3, %s3420_s21  ;;  %s2970_s19 = scalar_lea.vmem [#allocation8], %s3421_s18 }
  0x62   : > { %s2757_s16 = smov [#allocation13]   ;;  %s2758_s9 = smov [#allocation14]  }
  0x63   : > { %s314_s30 = sshll.u32 %s2757_s16, 4  ;;  %s327_s26 = sshll.u32 %s2758_s9, 4  ;;  %s315_s30 = int_to_ptr.vmem [resolvable:$true] %s314_s30  ;;  %s328_s26 = int_to_ptr.vmem [resolvable:$true] %s327_s26 }
  0x64   : > { %s2537_s6 = scalar_lea.vmem %s315_s30, 4096  ;;  %p3422_p8 = scmp.ne.s32.totalorder %s3409_s20, 0 }
  0x65   : > { %p2538_p4 = scmp.ne.s32.totalorder %s315_s30, %s2537_s6  ;;  %p2545_p2 = scmp.lt.s32.totalorder %s315_s30, %s315_s30 }
  0x66   : > { %p3423_p11 = pneg %p3422_p8  ;;  %p2546_p6 = scmp.lt.s32.totalorder %s2537_s6, %s2537_s6 }
  0x68   : > { %p2540_p12 = pnand %p2538_p4, %p3423_p11  ;;  %p2547_p3 = por %p2546_p6, %p2545_p2 }
  0x6a   : > { %p2541_p9 = pneg %p2540_p12 }
  0x6c   : > { %p2548_p7 = pnand %p2547_p3, %p2541_p9 }
  0x6e   : > { %2551 = shalt.err (!%p2548_p7)
}
  0x6f   : > { %2318 = dma.hbm_to_vmem [thread:$0]  (!%p3422_p8), %s3373_s7, 4096, %s315_s30, [#allocation12], %s3394_s25, %s3394_s25, %s2756_s28  }
  0x70   : > { %s2563_s9 = scalar_lea.vmem %s328_s26, 256  ;;  %p3424_p5 = pmov %p3423_p11 }
  0x71   : > { %p2564_p13 = scmp.ne.s32.totalorder %s328_s26, %s2563_s9  ;;  %p2571_p11 = scmp.lt.s32.totalorder %s328_s26, %s328_s26 }
  0x72   : > { %p2572_p12 = scmp.lt.s32.totalorder %s2563_s9, %s2563_s9 }
  0x73   : > { %p2566_p1 = pnand %p2564_p13, %p3424_p5 }
  0x74   : > { %p2573_p9 = por %p2572_p12, %p2571_p11 }
  0x75   : > { %p2567_p4 = pneg %p2566_p1 }
  0x77   : > { %p2574_p2 = pnand %p2573_p9, %p2567_p4 }
  0x79   : > { %2577 = shalt.err (!%p2574_p2)
}
  0x7a   : > { %2321 = dma.hbm_to_vmem [thread:$0]  (!%p3422_p8), %s3374_s8, 256, %s328_s26, [#allocation15], %s3394_s25, %s3394_s25, %s2756_s28  }
  0x7b   : > { %s3396_s30 = sshll.u32 %s2907_s22, 5  ;;  %s2036_s21 = sshll.u32 %s2746_s12, 9 }
  0x7c   : > { %s3425_s0 = sld [smem:[#allocation30_spill]]  ;;  %s345_s20 = scalar_lea.vmem [#allocation2], %s3396_s30 }
  0x7d   : > { %s353_s4 = sshll.u32 %s345_s20, 4  ;;  %s3009_s6 = scalar_lea.hbm %s3368_s2, %s2036_s21  ;;  %s3004_s4 = int_to_ptr.vmem [resolvable:$true] %s353_s4 }
  0x7e   : > { %s342_s26 = scalar_lea.sflag [#allocation3], %s2907_s22 }
  0x82   : > { %s3000_s18 = scalar_lea.hbm %s3425_s0, %s2036_s21  ;;  %s2583_s1 = scalar_lea.hbm %s3425_s0, 1024 }
  0x83   : > { %s2578_s23 = scalar_lea.hbm %s3000_s18, 512  ;;  %p2584_p7 = scmp.lt.s32.totalorder %s3000_s18, %s3425_s0 }
  0x84   : > { %p2579_p8 = scmp.ne.s32.totalorder %s3000_s18, %s2578_s23  ;;  %p2585_p13 = scmp.lt.s32.totalorder %s2583_s1, %s2578_s23 }
  0x86   : > { %p2581_p6 = pnand %p2579_p8, %p2935_p10  ;;  %p2586_p5 = por %p2585_p13, %p2584_p7 }
  0x88   : > { %p2582_p3 = pneg %p2581_p6 }
  0x8a   : > { %p2587_p1 = pnand %p2586_p5, %p2582_p3 }
  0x8c   : > { %2590 = shalt.err (!%p2587_p1)
}
  0x8d   : > { %s2591_s21 = scalar_lea.vmem %s3004_s4, 512  ;;  %s2759_s20 = smov [#allocation2]  }
  0x8e   : > { %p2592_p4 = scmp.ne.s32.totalorder %s3004_s4, %s2591_s21  ;;  %s2596_s16 = sshll.u32 %s2759_s20, 4  ;;  %s2597_s16 = int_to_ptr.vmem [resolvable:$false] %s2596_s16 }
  0x8f   : > { %s2598_s9 = scalar_lea.vmem %s2597_s16, 1024  ;;  %p2599_p9 = scmp.lt.s32.totalorder %s3004_s4, %s2597_s16 }
  0x90   : > { %p2594_p11 = pnand %p2592_p4, %p2935_p10  ;;  %p2600_p2 = scmp.lt.s32.totalorder %s2598_s9, %s2591_s21 }
  0x92   : > { %p2595_p12 = pneg %p2594_p11  ;;  %p2601_p8 = por %p2600_p2, %p2599_p9 }
  0x94   : > { %p2602_p6 = pnand %p2601_p8, %p2595_p12 }
  0x96   : > { %2605 = shalt.err (!%p2602_p6)
}
  0x97   : > { %s3426_s1 = smov 128   ;;  %s3427_s25 = sshll.u32 %s2970_s19, 4  ;;  %s3037_s25 = int_to_ptr.vmem [resolvable:$true] %s3427_s25 }
  0x98   : > { %2325 = dma.hbm_to_vmem [thread:$0]  (!%p2911_p0), %s3000_s18, 512, %s3004_s4, %s342_s26, %s3426_s1, %s3426_s1, %s2756_s28  }
  0x99   : > { %s3428_s30 = sshll.u32 %s2907_s22, 5  ;;  %s2606_s27 = scalar_lea.hbm %s3009_s6, 512 }
  0x9a   : > { %s388_s23 = scalar_lea.vmem [#allocation7], %s3428_s30  ;;  %p2607_p3 = scmp.ne.s32.totalorder %s3009_s6, %s2606_s27 }
  0x9b   : > { %s396_s14 = sshll.u32 %s388_s23, 4  ;;  %s2611_s16 = scalar_lea.hbm %s3368_s2, 1024  ;;  %s397_s14 = int_to_ptr.vmem [resolvable:$true] %s396_s14 }
  0x9c   : > { %p2609_p7 = pnand %p2607_p3, %p2935_p10  ;;  %p2612_p5 = scmp.lt.s32.totalorder %s3009_s6, %s3368_s2 }
  0x9d   : > { %p2613_p1 = scmp.lt.s32.totalorder %s2611_s16, %s2606_s27 }
  0x9e   : > { %p2610_p13 = pneg %p2609_p7 }
  0x9f   : > { %p2614_p4 = por %p2613_p1, %p2612_p5 }
  0xa1   : > { %p2615_p11 = pnand %p2614_p4, %p2610_p13 }
  0xa3   : > { %2618 = shalt.err (!%p2615_p11)
}
  0xa4   : > { %s2619_s22 = scalar_lea.vmem %s397_s14, 512  ;;  %s2760_s19 = smov [#allocation7]  }
  0xa5   : > { %p2620_p12 = scmp.ne.s32.totalorder %s397_s14, %s2619_s22  ;;  %s2624_s18 = sshll.u32 %s2760_s19, 4  ;;  %s2625_s18 = int_to_ptr.vmem [resolvable:$false] %s2624_s18 }
  0xa6   : > { %s2626_s4 = scalar_lea.vmem %s2625_s18, 1024  ;;  %p2627_p8 = scmp.lt.s32.totalorder %s397_s14, %s2625_s18 }
  0xa7   : > { %p2622_p9 = pnand %p2620_p12, %p2935_p10  ;;  %p2628_p6 = scmp.lt.s32.totalorder %s2626_s4, %s2619_s22 }
  0xa9   : > { %p2623_p2 = pneg %p2622_p9  ;;  %p2629_p3 = por %p2628_p6, %p2627_p8 }
  0xab   : > { %p2630_p7 = pnand %p2629_p3, %p2623_p2 }
  0xad   : > { %2633 = shalt.err (!%p2630_p7)
}
  0xae   : > { %2331 = dma.hbm_to_vmem [thread:$0]  (!%p2911_p0), %s3009_s6, 512, %s397_s14, %s2929_s5, %s3426_s1, %s3426_s1, %s2756_s28  }
  0xaf   : > { %s3429_s0 = sand.u32 1, %s2746_s12   ;;  %s2634_s30 = scalar_lea.hbm %s2966_s24, 256 }
  0xb0   : > { %s407_s26 = scalar_lea.sflag [#allocation9], %s3429_s0  ;;  %p2635_p13 = scmp.ne.s32.totalorder %s2966_s24, %s2634_s30 }
  0xb1   : > { %s2639_s21 = scalar_lea.hbm %s3369_s3, 512  ;;  %p2640_p4 = scmp.lt.s32.totalorder %s2966_s24, %s3369_s3 }
  0xb2   : > { %p2637_p5 = pnand %p2635_p13, %p2935_p10  ;;  %p2641_p11 = scmp.lt.s32.totalorder %s2639_s21, %s2634_s30 }
  0xb4   : > { %p2638_p1 = pneg %p2637_p5  ;;  %p2642_p12 = por %p2641_p11, %p2640_p4 }
  0xb6   : > { %p2643_p9 = pnand %p2642_p12, %p2638_p1 }
  0xb8   : > { %2646 = shalt.err (!%p2643_p9)
}
  0xb9   : > { %s2647_s5 = scalar_lea.vmem %s3037_s25, 256  ;;  %s2761_s6 = smov [#allocation8]  }
  0xba   : > { %p2648_p2 = scmp.ne.s32.totalorder %s3037_s25, %s2647_s5  ;;  %s2652_s14 = sshll.u32 %s2761_s6, 4  ;;  %s2653_s14 = int_to_ptr.vmem [resolvable:$false] %s2652_s14 }
  0xbb   : > { %s2654_s9 = scalar_lea.vmem %s2653_s14, 512  ;;  %p2655_p3 = scmp.lt.s32.totalorder %s3037_s25, %s2653_s14 }
  0xbc   : > { %p2650_p8 = pnand %p2648_p2, %p2935_p10  ;;  %p2656_p7 = scmp.lt.s32.totalorder %s2654_s9, %s2647_s5 }
  0xbe   : > { %p2651_p6 = pneg %p2650_p8  ;;  %p2657_p13 = por %p2656_p7, %p2655_p3 }
  0xc0   : > { %p2658_p5 = pnand %p2657_p13, %p2651_p6 }
  0xc2   : > { %2661 = shalt.err (!%p2658_p5)
}
  0xc3   : > { %2334 = dma.hbm_to_vmem [thread:$0]  (!%p2911_p0), %s2966_s24, 256, %s3037_s25, %s407_s26, %s3426_s1, %s3426_s1, %s2756_s28  }
  0xc4   : > { %p3430_p10 = scmp.ne.s32.totalorder %s3408_s17, 0 }
  0xc5   : > { %s3089_s11 = sand.u32 (!%p3430_p10), 1, %s2738_s10   ;;  %p3431_p1 = scmp.ne.s32.totalorder (!%p3430_p10), %s3405_s15, 0 }
  0xc6   : > { %429 = sbr.rel (%p3430_p10) target bundleno = 2566 (0xa06), region = 56  ;;  %s3092_s22 = sshll.u32 (!%p3430_p10), %s3089_s11, 5 }
  0xc7   : > { %s432_s19 = scalar_lea.sflag (!%p3430_p10), [#allocation3], %s3089_s11  ;;  %s3096_s29 = scalar_lea.vmem (!%p3430_p10), [#allocation2], %s3092_s22 }
  0xcb   : > { %2705 = dma.done.wait (%p3431_p1), %s432_s19, 512  }
  0xcc   : > { %2707 = vsyncadd (%p3431_p1), %s432_s19, 4294966784  ;;  %s440_s17 = sand.u32 1, %s2837_s13   ;;  %s2017_s28 = sshll.u32 %s3089_s11, 4 }
  0xcd   : > { %s441_s24 = scalar_lea.sflag [#allocation6], %s440_s17  ;;  %s3104_s1 = scalar_lea.vmem [#allocation5], %s2017_s28 }
  0xce   : > { %2709 = dma.done.wait (%p3431_p1), %s441_s24, 768  }
  0xcf   : > { %2711 = vsyncadd (%p3431_p1), %s441_s24, 4294966528  ;;  %s3111_s25 = scalar_lea.vmem [#allocation7], %s3092_s22  ;;  %s459_s18 = scalar_lea.sflag [#allocation9], %s440_s17 }
  0xd0   : > { %s3113_s4 = scalar_lea.vmem [#allocation8], %s2017_s28 }
  0xd1   : > { %2713 = dma.done.wait (%p3431_p1), %s459_s18, 256  }
  0xd2   : > { %2715 = vsyncadd (%p3431_p1), %s459_s18, 4294967040  ;;  %p3432_p0 = scmp.eq.s32.totalorder %s2837_s13, 0 }
  0xd4   : > { %2717 = dma.done.wait (%p3432_p0), [#allocation9], 6144   ;;  %p3433_p4 = pmov %p3432_p0 }
  0xd5   : > { %p3434_p11 = pmov %p3432_p0 }
  0xd6   : > { %2719 = vsyncadd (%p3433_p4), [#allocation9], 4294961152 }
  0xd7   : > { %2721 = dma.done.wait (%p3434_p11), [#allocation12], 8192   ;;  %p3435_p12 = pmov %p3432_p0 }
  0xd8   : > { %p3436_p9 = pmov %p3432_p0 }
  0xd9   : > { %2723 = vsyncadd (%p3435_p12), [#allocation12], 4294959104 }
  0xda   : > { %2725 = dma.done.wait (%p3436_p9), [#allocation15], 256   ;;  %p3437_p2 = pmov %p3432_p0 }
  0xdb   : > { %v568_v0 = vld [vmem:[#allocation10 + $0x168] sm:$0xff]  ;;  %v673_v1 = vld [vmem:[#allocation10 + $0x170] sm:$0xff]  ;;  %v672_v3 = vld [vmem:[#allocation10 + $0x158] sm:$0xff]  ;;  %vm1127_vm0 = vcmask 64512   ;;  %s3438_s26 = sld [smem:[#allocation34_spill]]  ;;  %s527_s30 = scalar_lea.vmem [#allocation16], %s3092_s22 }
  0xdc   : > { %2727 = vsyncadd (%p3437_p2), [#allocation15], 4294967040  ;;  %v567_v2 = vld [vmem:[#allocation10 + $0x150] sm:$0xff]  ;;  %2155 = vmatprep.subr.mxu0 %v568_v0  ;;  %2193 = vmatprep.subr.mxu1 %v673_v1  ;;  %v566_v4 = vld [vmem:[#allocation10 + $0x138] sm:$0xff]  ;;  %s3439_s23 = sld [smem:[#allocation29_spill]]  ;;  %s2042_s27 = sshll.u32 %s2837_s13, 9 }
  0xdd   : > { %2156 = vmatpush3.msra.mxu0 %v568_v0  ;;  %2194 = vmatpush3.msra.mxu1 %v673_v1  ;;  %v671_v5 = vld [vmem:[#allocation10 + $0x140] sm:$0xff]  ;;  %v670_v7 = vld [vmem:[#allocation10 + $0x128] sm:$0xff]  ;;  %v669_v9 = vld [vmem:[#allocation10 + $0x110] sm:$0xff]  ;;  %s1817_s21 = sshll.u32 %s527_s30, 4  ;;  %s3440_s5 = sld [smem:[#allocation35_spill]]  ;;  %s3323_s21 = int_to_ptr.vmem [resolvable:$true] %s1817_s21 }
  0xde   : > { %2157 = vmatprep.subr.mxu0 %v567_v2  ;;  %2195 = vmatprep.subr.mxu1 %v672_v3  ;;  %v565_v6 = vld [vmem:[#allocation10 + $0x120] sm:$0xff]  ;;  %v564_v8 = vld [vmem:[#allocation10 + $0x108] sm:$0xff]  ;;  %v563_v10 = vld [vmem:[#allocation10 + $0xf0] sm:$0xff]  ;;  %s1803_s14 = scalar_lea.sflag [#allocation4], %s3089_s11  ;;  %s2662_s9 = scalar_lea.vmem %s3323_s21, 512 }
  0xdf   : > { %2158 = vmatpush3.msra.mxu0 %v567_v2  ;;  %2196 = vmatpush3.msra.mxu1 %v672_v3  ;;  %v668_v11 = vld [vmem:[#allocation10 + $0xf8] sm:$0xff]  ;;  %v667_v13 = vld [vmem:[#allocation10 + $0xe0] sm:$0xff]  ;;  %v666_v15 = vld [vmem:[#allocation10 + $0xc8] sm:$0xff]  ;;  %v569_v2 = vlaneseq  ;;  %p2663_p8 = scmp.ne.s32.totalorder %s3323_s21, %s2662_s9  ;;  %s2763_s13 = smov [#allocation16]  }
  0xe0   : > { %2159 = vmatprep.subr.mxu0 %v566_v4  ;;  %2197 = vmatprep.subr.mxu1 %v671_v5  ;;  %v562_v12 = vld [vmem:[#allocation10 + $0xd8] sm:$0xff]  ;;  %v561_v14 = vld [vmem:[#allocation10 + $0xc0] sm:$0xff]  ;;  %v560_v16 = vld [vmem:[#allocation10 + $0xa8] sm:$0xff]  ;;  %s2666_s22 = sshll.u32 %s2763_s13, 4  ;;  %s2667_s22 = int_to_ptr.vmem [resolvable:$false] %s2666_s22 }
  0xe1   : > { %2160 = vmatpush3.msra.mxu0 %v566_v4  ;;  %2198 = vmatpush3.msra.mxu1 %v671_v5  ;;  %v665_v17 = vld [vmem:[#allocation10 + $0xb0] sm:$0xff]  ;;  %v664_v19 = vld [vmem:[#allocation10 + $0x98] sm:$0xff]  ;;  %v663_v21 = vld [vmem:[#allocation10 + $0x80] sm:$0xff]  ;;  %v3159_v3 = vshrl.u32 %v569_v2, 7  ;;  %s2668_s19 = scalar_lea.vmem %s2667_s22, 1024  ;;  %p2669_p13 = scmp.lt.s32.totalorder %s3323_s21, %s2667_s22 }
  0xe2   : > { %2161 = vmatprep.subr.mxu0 %v565_v6  ;;  %2199 = vmatprep.subr.mxu1 %v670_v7  ;;  %v559_v18 = vld [vmem:[#allocation10 + $0x90] sm:$0xff]  ;;  %v558_v20 = vld [vmem:[#allocation10 + $0x78] sm:$0xff]  ;;  %v557_v22 = vld [vmem:[#allocation10 + $0x60] sm:$0xff]  ;;  %p3441_p6 = scmp.ne.s32.totalorder %s3439_s23, 0  ;;  %p2670_p5 = scmp.lt.s32.totalorder %s2668_s19, %s2662_s9 }
  0xe3   : > { %2162 = vmatpush3.msra.mxu0 %v565_v6  ;;  %2200 = vmatpush3.msra.mxu1 %v670_v7  ;;  %v662_v23 = vld [vmem:[#allocation10 + $0x68] sm:$0xff]  ;;  %v661_v25 = vld [vmem:[#allocation10 + $0x50] sm:$0xff]  ;;  %v660_v27 = vld [vmem:[#allocation10 + $0x38] sm:$0xff]  ;;  %v3162_v4 = vsub.s32 0, %v3159_v3  ;;  %v3169_v7 = vsub.s32 1, %v3159_v3  ;;  %s3321_s6 = scalar_lea.hbm %s3440_s5, %s2042_s27 }
  0xe4   : > { %2163 = vmatprep.subr.mxu0 %v564_v8  ;;  %2201 = vmatprep.subr.mxu1 %v669_v9  ;;  %v556_v24 = vld [vmem:[#allocation10 + $0x48] sm:$0xff]  ;;  %v555_v26 = vld [vmem:[#allocation10 + $0x30] sm:$0xff]  ;;  %v554_v28 = vld [vmem:[#allocation10 + $0x18] sm:$0xff]  ;;  %p2664_p3 = pnand %p2663_p8, %p3441_p6  ;;  %p2671_p10 = por %p2670_p5, %p2669_p13 }
  0xe5   : > { %2164 = vmatpush3.msra.mxu0 %v564_v8  ;;  %2202 = vmatpush3.msra.mxu1 %v669_v9  ;;  %v659_v29 = vld [vmem:[#allocation10 + $0x20] sm:$0xff]  ;;  %v3138_v35 = vld [vmem:[%s3096_s29 + $0x8] sm:$0xff]  ;;  %v3147_v41 = vld [vmem:[%s3096_s29 + $0x10] sm:$0xff] }
  0xe6   : > { %2165 = vmatprep.subr.mxu0 %v563_v10  ;;  %2203 = vmatprep.subr.mxu1 %v668_v11  ;;  %v3132_v30 = vld [vmem:[%s3096_s29] sm:$0xff]  ;;  %v542_v36 = vld [vmem:[%s3111_s25 + $0x8] sm:$0xff]  ;;  %v543_v42 = vld [vmem:[%s3111_s25 + $0x10] sm:$0xff]  ;;  %p2665_p7 = pneg %p2664_p3 }
  0xe7   : > { %2166 = vmatpush3.msra.mxu0 %v563_v10  ;;  %2204 = vmatpush3.msra.mxu1 %v668_v11  ;;  %v541_v31 = vld [vmem:[%s3111_s25] sm:$0xff]  ;;  %v3142_v37 = vld [vmem:[%s3104_s1 + $0x8] sm:$0xff]  ;;  %v546_v44 = vadd.f32 %v542_v36, %v3138_v35  ;;  %v547_v46 = vadd.f32 %v543_v42, %v3147_v41  ;;  %v765_v53 = vld [vmem:[#allocation10 + $0x130] sm:$0xff]  ;;  %v771_v36 = vsub.s32 2, %v3159_v3 }
  0xe8   : > { %2167 = vmatprep.subr.mxu0 %v562_v12  ;;  %2205 = vmatprep.subr.mxu1 %v667_v13  ;;  %v553_v32 = vld [vmem:[#allocation10] sm:$0xff]  ;;  %v550_v38 = vld [vmem:[%s3113_s4 + $0x8] sm:$0xff]  ;;  %v545_v40 = vadd.f32 %v541_v31, %v3132_v30  ;;  %v761_v57 = vld [vmem:[#allocation10 + $0xd0] sm:$0xff]  ;;  %p2672_p1 = pnand %p2671_p10, %p2665_p7 }
  0xe9   : > { %2168 = vmatpush3.msra.mxu0 %v562_v12  ;;  %2206 = vmatpush3.msra.mxu1 %v667_v13  ;;  %v539_v33 = vld [vmem:[%s3104_s1] sm:$0xff]  ;;  %v658_v39 = vld [vmem:[#allocation10 + $0x8] sm:$0xff]  ;;  %v552_v45 = vadd.f32 %v550_v38, %v3142_v37  ;;  %v3154_v47 = vld [vmem:[%s3096_s29 + $0x18] sm:$0xff] }
  0xea   : > { %2169 = vmatprep.subr.mxu0 %v561_v14  ;;  %2207 = vmatprep.subr.mxu1 %v666_v15  ;;  %v549_v34 = vld [vmem:[%s3113_s4] sm:$0xff]  ;;  %v544_v48 = vld [vmem:[%s3111_s25 + $0x18] sm:$0xff]  ;;  %v766_v52 = vld [vmem:[#allocation10 + $0x148] sm:$0xff] }
  0xeb   : > { %2170 = vmatpush3.msra.mxu0 %v561_v14  ;;  %2208 = vmatpush3.msra.mxu1 %v666_v15  ;;  %v551_v43 = vadd.f32 %v549_v34, %v539_v33  ;;  %v768_v49 = vld [vmem:[#allocation10 + $0x178] sm:$0xff]  ;;  %v548_v50 = vadd.f32 %v544_v48, %v3154_v47  ;;  %v767_v51 = vld [vmem:[#allocation10 + $0x160] sm:$0xff]  ;;  %v762_v56 = vld [vmem:[#allocation10 + $0xe8] sm:$0xff] }
  0xec   : > { %2171 = vmatprep.subr.mxu0 %v560_v16  ;;  %2209 = vmatprep.subr.mxu1 %v665_v17  ;;  %v764_v54 = vld [vmem:[#allocation10 + $0x118] sm:$0xff]  ;;  %v763_v55 = vld [vmem:[#allocation10 + $0x100] sm:$0xff]  ;;  %v758_v60 = vld [vmem:[#allocation10 + $0x88] sm:$0xff] }
  0xed   : > { %2172 = vmatpush3.msra.mxu0 %v560_v16  ;;  %2210 = vmatpush3.msra.mxu1 %v665_v17  ;;  %v760_v58 = vld [vmem:[#allocation10 + $0xb8] sm:$0xff]  ;;  %v759_v59 = vld [vmem:[#allocation10 + $0xa0] sm:$0xff]  ;;  %v757_v61 = vld [vmem:[#allocation10 + $0x70] sm:$0xff] }
  0xee   : > { %2173 = vmatprep.subr.mxu0 %v559_v18  ;;  %2211 = vmatprep.subr.mxu1 %v664_v19  ;;  %v756_v62 = vld [vmem:[#allocation10 + $0x58] sm:$0xff]  ;;  %v755_v63 = vld [vmem:[#allocation10 + $0x40] sm:$0xff]  ;;  %v754_v0 = vld [vmem:[#allocation10 + $0x28] sm:$0xff] }
  0xef   : > { %2174 = vmatpush3.msra.mxu0 %v559_v18  ;;  %2212 = vmatpush3.msra.mxu1 %v664_v19  ;;  %v753_v1 = vld [vmem:[#allocation10 + $0x10] sm:$0xff]  ;;  %v3164_v5 = vld [vmem:[#allocation14] sm:$0xff] }
  0xf0   : > { %2175 = vmatprep.subr.mxu0 %v558_v20  ;;  %2213 = vmatprep.subr.mxu1 %v663_v21  ;;  %v572_v6 = vrot.slane %v3164_v5, %v3162_v4  ;;  %v677_v11 = vrot.slane %v3164_v5, %v3169_v7 }
  0xf1   : > { %2176 = vmatpush3.msra.mxu0 %v558_v20  ;;  %2214 = vmatpush3.msra.mxu1 %v663_v21 }
  0xf2   : > { %2177 = vmatprep.subr.mxu0 %v557_v22  ;;  %2215 = vmatprep.subr.mxu1 %v662_v23 }
  0xf3   : > { %2178 = vmatpush3.msra.mxu0 %v557_v22  ;;  %2216 = vmatpush3.msra.mxu1 %v662_v23 }
  0xf4   : > { %2179 = vmatprep.subr.mxu0 %v556_v24  ;;  %2217 = vmatprep.subr.mxu1 %v661_v25 }
  0xf5   : > { %2180 = vmatpush3.msra.mxu0 %v556_v24  ;;  %2218 = vmatpush3.msra.mxu1 %v661_v25 }
  0xf6   : > { %2181 = vmatprep.subr.mxu0 %v555_v26  ;;  %2219 = vmatprep.subr.mxu1 %v660_v27 }
  0xf7   : > { %2182 = vmatpush3.msra.mxu0 %v555_v26  ;;  %2220 = vmatpush3.msra.mxu1 %v660_v27 }
  0xf8   : > { %2183 = vmatprep.subr.mxu0 %v554_v28  ;;  %2221 = vmatprep.subr.mxu1 %v659_v29 }
  0xf9   : > { %2184 = vmatpush3.msra.mxu0 %v554_v28  ;;  %2222 = vmatpush3.msra.mxu1 %v659_v29 }
  0xfa   : > { %2185 = vmatprep.subr.mxu0 %v553_v32  ;;  %2223 = vmatprep.subr.mxu1 %v658_v39 }
  0xfb   : > { %2186 = vmatpush3.msra.mxu0 %v553_v32  ;;  %2187 = vmatprep.mubr.f32.mxu0 %v545_v40 }
  0xfc   : > { %2224 = vmatpush3.msra.mxu1 %v658_v39  ;;  %2225 = vmatprep.mubr.f32.mxu1 %v551_v43 }
  0xfd   : > { %2188 = vmatmul.mubr.f32.vlgmr.msra.gmra.mxu0 %v546_v44  ;;  %2226 = vmatmul.mubr.f32.vlgmr.msra.gmra.mxu1 %v552_v45 }
  0xfe   : > { %2190 = vmatprep.mubr.f32.mxu0 %v547_v46  ;;  %2228 = vmatprep.subr.mxu0 %v768_v49  ;;  %v772_v46 = vrot.slane %v3164_v5, %v771_v36 }
  0xff   : > { %2229 = vmatpush3.msra.mxu0 %v768_v49 }
 0x100   : > { %2230 = vmatprep.subr.mxu0 %v767_v51 }
 0x101   : > { %2191 = vmatmul.mubr.f32.gmra.mxu0 %v548_v50 }
 0x102   : > { %2231 = vmatpush3.msra.mxu0 %v767_v51  ;;  %2260 = vmatprep.mubr.f32.mxu0 %v539_v33 }
 0x103   : > { %2232 = vmatprep.subr.mxu0 %v766_v52 }
 0x104   : > { %2233 = vmatpush3.msra.mxu0 %v766_v52 }
 0x105   : > { %2234 = vmatprep.subr.mxu0 %v765_v53 }
 0x106   : > { %2235 = vmatpush3.msra.mxu0 %v765_v53 }
 0x107   : > { %2236 = vmatprep.subr.mxu0 %v764_v54 }
 0x108   : > { %2237 = vmatpush3.msra.mxu0 %v764_v54 }
 0x109   : > { %2238 = vmatprep.subr.mxu0 %v763_v55 }
 0x10a   : > { %2239 = vmatpush3.msra.mxu0 %v763_v55 }
 0x10b   : > { %2240 = vmatprep.subr.mxu0 %v762_v56 }
 0x10c   : > { %2241 = vmatpush3.msra.mxu0 %v762_v56 }
 0x10d   : > { %2242 = vmatprep.subr.mxu0 %v761_v57 }
 0x10e   : > { %2243 = vmatpush3.msra.mxu0 %v761_v57 }
 0x10f   : > { %2244 = vmatprep.subr.mxu0 %v760_v58 }
 0x110   : > { %2245 = vmatpush3.msra.mxu0 %v760_v58 }
 0x111   : > { %2246 = vmatprep.subr.mxu0 %v759_v59 }
 0x112   : > { %2247 = vmatpush3.msra.mxu0 %v759_v59 }
 0x113   : > { %2248 = vmatprep.subr.mxu0 %v758_v60 }
 0x114   : > { %2249 = vmatpush3.msra.mxu0 %v758_v60 }
 0x115   : > { %2250 = vmatprep.subr.mxu0 %v757_v61 }
 0x116   : > { %2251 = vmatpush3.msra.mxu0 %v757_v61 }
 0x117   : > { %2252 = vmatprep.subr.mxu0 %v756_v62 }
 0x118   : > { %2253 = vmatpush3.msra.mxu0 %v756_v62 }
 0x119   : > { %2254 = vmatprep.subr.mxu0 %v755_v63 }
 0x11a   : > { %2255 = vmatpush3.msra.mxu0 %v755_v63 }
 0x11b   : > { %2256 = vmatprep.subr.mxu0 %v754_v0 }
 0x11c   : > { %2257 = vmatpush3.msra.mxu0 %v754_v0 }
 0x11d   : > { %2258 = vmatprep.subr.mxu0 %v753_v1 }
 0x11e   : > { %2259 = vmatpush3.msra.mxu0 %v753_v1 }
 0x11f   : > { %2261 = vmatmul.mubr.f32.vlgmr.msra.gmra.mxu0 %v3142_v37 }
 0x1bd   : > { %v2189_v8 = vpop.f32.mrf.mxu0  ;;  %v2227_v9 = vpop.f32.mrf.mxu1 }
 0x1be   : > { %v645_v10 = vadd.f32 %v2189_v8, %v572_v6  ;;  %v750_v16 = vadd.f32 %v2227_v9, %v677_v11 }
 0x1bf   : > { %v744_v12 = vpop.f32.mrf.mxu1  ;;  %v639_v13 = vpop.f32.mrf.mxu0 }
 0x1c0   : > { %v745_v14 = vadd.f32 %v744_v12, %v677_v11  ;;  %850 = vadd.xlane.f32.xlu1 %v645_v10  ;;  %v640_v18 = vadd.f32 %v639_v13, %v572_v6  ;;  %v933_v12 = vsub.s32 5, %v3159_v3 }
 0x1c1   : > { %v2192_v15 = vpop.f32.mrf.mxu0 }
 0x1c2   : > { %909 = vadd.xlane.f32.xlu0 %v745_v14  ;;  %v655_v19 = vadd.f32 %v2192_v15, %v572_v6 }
 0x1c3   : > { %v649_v17 = vpop.f32.mrf.mxu0 }
 0x1c4   : > { %911 = vadd.xlane.f32.xlu1 %v750_v16  ;;  %v650_v20 = vadd.f32 %v649_v17, %v572_v6  ;;  %v939_v17 = vsub.s32 6, %v3159_v3 }
 0x1c6   : > { %848 = vadd.xlane.f32.xlu0 %v640_v18 }
 0x1c8   : > { %854 = vadd.xlane.f32.xlu1 %v655_v19 }
 0x1ca   : > { %852 = vadd.xlane.f32.xlu0 %v650_v20 }
 0x1df   : > { %v2262_v39 = vpop.f32.mrf.mxu0 }
 0x1e0   : > { %v845_v54 = vadd.f32 %v2262_v39, %v772_v46 }
 0x1e1   : > { %v839_v48 = vpop.f32.mrf.mxu0 }
 0x1e2   : > { %v840_v52 = vadd.f32 %v839_v48, %v772_v46 }
 0x249   : > { %v851_v21 = vpop.xlane.xlu1 %850 }
 0x24a   : > { %v858_v22 = vmul.f32 0.0078125, %v851_v21 }
 0x24b   : > { %v910_v23 = vpop.xlane.xlu0 %909 }
 0x24c   : > { %v913_v24 = vmul.f32 0.0078125, %v910_v23  ;;  %v3175_v27 = vsub.f32 %v645_v10, %v858_v22  ;;  %v895_v22 = vsub.s32 3, %v3159_v3 }
 0x24d   : > { %v912_v25 = vpop.xlane.xlu1 %911 }
 0x24e   : > { %v3173_v26 = vsub.f32 %v745_v14, %v913_v24  ;;  %v914_v29 = vmul.f32 0.0078125, %v912_v25  ;;  %v866_v38 = vmul.f32 %v3175_v27, %v3175_v27 }
 0x24f   : > { %v849_v28 = vpop.xlane.xlu0 %848 }
 0x250   : > { %v857_v31 = vmul.f32 0.0078125, %v849_v28  ;;  %v917_v32 = vmul.f32 %v3173_v26, %v3173_v26  ;;  %v3184_v40 = vsub.f32 %v750_v16, %v914_v29  ;;  %v940_v28 = vrot.slane %v3164_v5, %v939_v17 }
 0x251   : > { %v855_v33 = vpop.xlane.xlu1 %854  ;;  %v903_v29 = vsub.s32 4, %v3159_v3 }
 0x252   : > { %v3179_v34 = vsub.f32 %v640_v18, %v857_v31  ;;  %919 = vadd.xlane.f32.xlu0 %v917_v32  ;;  %v860_v42 = vmul.f32 0.0078125, %v855_v33  ;;  %v918_v50 = vmul.f32 %v3184_v40, %v3184_v40  ;;  %v896_v33 = vrot.slane %v3164_v5, %v895_v22 }
 0x253   : > { %v853_v37 = vpop.xlane.xlu0 %852 }
 0x254   : > { %v859_v43 = vmul.f32 0.0078125, %v853_v37  ;;  %v865_v44 = vmul.f32 %v3179_v34, %v3179_v34  ;;  %v3193_v49 = vsub.f32 %v655_v19, %v860_v42  ;;  %v934_v19 = vrot.slane %v3164_v5, %v933_v12 }
 0x256   : > { %v3188_v45 = vsub.f32 %v650_v20, %v859_v43  ;;  %871 = vadd.xlane.f32.xlu0 %v866_v38  ;;  %869 = vadd.xlane.f32.xlu1 %v865_v44  ;;  %v868_v53 = vmul.f32 %v3193_v49, %v3193_v49 }
 0x258   : > { %v867_v51 = vmul.f32 %v3188_v45, %v3188_v45 }
 0x25a   : > { %921 = vadd.xlane.f32.xlu1 %v918_v50  ;;  %873 = vadd.xlane.f32.xlu0 %v867_v51 }
 0x25e   : > { %875 = vadd.xlane.f32.xlu1 %v868_v53  ;;  %943 = vadd.xlane.f32.xlu0 %v840_v52 }
 0x262   : > { %945 = vadd.xlane.f32.xlu1 %v845_v54 }
 0x2db   : > { %v920_v55 = vpop.xlane.xlu0 %919 }
 0x2dc   : > { %v923_v56 = vmul.f32 0.0078125, %v920_v55 }
 0x2de   : > { %v925_v57 = vadd.f32 1e-05, %v923_v56 }
 0x2df   : > { %v870_v58 = vpop.xlane.xlu1 %869  ;;  %v872_v59 = vpop.xlane.xlu0 %871 }
 0x2e0   : > { %2394 = vrsqrt.f32 %v925_v57  ;;  %v877_v60 = vmul.f32 0.0078125, %v870_v58  ;;  %v878_v61 = vmul.f32 0.0078125, %v872_v59 }
 0x2e2   : > { %v881_v62 = vadd.f32 1e-05, %v877_v60  ;;  %v882_v63 = vadd.f32 1e-05, %v878_v61 }
 0x2e3   : > { %v922_v0 = vpop.xlane.xlu1 %921  ;;  %v874_v1 = vpop.xlane.xlu0 %873 }
 0x2e4   : > { %2396 = vrsqrt.f32 %v881_v62  ;;  %v924_v2 = vmul.f32 0.0078125, %v922_v0  ;;  %v879_v6 = vmul.f32 0.0078125, %v874_v1  ;;  %v967_v1 = vsub.s32 7, %v3159_v3 }
 0x2e5   : > { %2398 = vrsqrt.f32 %v882_v63 }
 0x2e6   : > { %v926_v8 = vadd.f32 1e-05, %v924_v2  ;;  %v883_v9 = vadd.f32 1e-05, %v879_v6  ;;  %v3224_v2 = vld [vmem:[#allocation14 + $0x8] sm:$0xff] }
 0x2e7   : > { %v876_v10 = vpop.xlane.xlu1 %875  ;;  %v944_v11 = vpop.xlane.xlu0 %943 }
 0x2e8   : > { %2400 = vrsqrt.f32 %v926_v8  ;;  %v880_v13 = vmul.f32 0.0078125, %v876_v10  ;;  %v947_v14 = vmul.f32 0.0078125, %v944_v11 }
 0x2e9   : > { %2402 = vrsqrt.f32 %v883_v9  ;;  %v974_v9 = vrot.slane %v3224_v2, %v3162_v4 }
 0x2ea   : > { %v884_v15 = vadd.f32 1e-05, %v880_v13  ;;  %v949_v16 = vsub.f32 %v840_v52, %v947_v14 }
 0x2eb   : > { %v946_v18 = vpop.xlane.xlu1 %945 }
 0x2ec   : > { %2404 = vrsqrt.f32 %v884_v15  ;;  %v948_v20 = vmul.f32 0.0078125, %v946_v18  ;;  %v951_v21 = vmul.f32 %v949_v16, %v949_v16 }
 0x2ed   : > { %v2395_v23 = vpop.eup %2394 }
 0x2ee   : > { %v950_v24 = vsub.f32 %v845_v54, %v948_v20  ;;  %953 = vadd.xlane.f32.xlu0 %v951_v21  ;;  %v929_v25 = vmul.f32 %v2395_v23, %v3173_v26  ;;  %v904_v26 = vrot.slane %v3164_v5, %v903_v29 }
 0x2f0   : > { %v952_v31 = vmul.f32 %v950_v24, %v950_v24  ;;  %v935_v32 = vmul.f32 %v934_v19, %v929_v25 }
 0x2f1   : > { %v2397_v37 = vpop.eup %2396 }
 0x2f2   : > { %v2399_v38 = vpop.eup %2398  ;;  %955 = vadd.xlane.f32.xlu1 %v952_v31  ;;  %v941_v39 = vadd.f32 %v940_v28, %v935_v32  ;;  %v889_v42 = vmul.f32 %v2397_v37, %v3179_v34 }
 0x2f3   : > { %v890_v43 = vmul.f32 %v2399_v38, %v3175_v27 }
 0x2f4   : > { %2263 = vmatprep.subr.mxu1 %v941_v39  ;;  %v897_v44 = vmul.f32 %v896_v33, %v889_v42 }
 0x2f5   : > { %v2401_v46 = vpop.eup %2400  ;;  %2264 = vmatpush3.xpose.msra.mxu1 %v941_v39  ;;  %v898_v48 = vmul.f32 %v896_v33, %v890_v43 }
 0x2f6   : > { %v2403_v50 = vpop.eup %2402  ;;  %v905_v51 = vadd.f32 %v904_v26, %v897_v44  ;;  %v930_v52 = vmul.f32 %v2401_v46, %v3184_v40 }
 0x2f7   : > { %v906_v53 = vadd.f32 %v904_v26, %v898_v48  ;;  %v891_v54 = vmul.f32 %v2403_v50, %v3188_v45 }
 0x2f8   : > { %2265 = vmatprep.mubr.f32.mxu1 %v905_v51  ;;  %v936_v34 = vmul.f32 %v934_v19, %v930_v52 }
 0x2f9   : > { %v2405_v55 = vpop.eup %2404  ;;  %2266 = vmatmul.mubr.f32.vlgmr.msra.gmra.mxu1 %v906_v53  ;;  %v899_v56 = vmul.f32 %v896_v33, %v891_v54 }
 0x2fa   : > { %v942_v57 = vadd.f32 %v940_v28, %v936_v34  ;;  %v892_v27 = vmul.f32 %v2405_v55, %v3193_v49  ;;  %v968_v49 = vrot.slane %v3164_v5, %v967_v1 }
 0x2fb   : > { %v907_v58 = vadd.f32 %v904_v26, %v899_v56 }
 0x2fc   : > { %2268 = vmatprep.subr.mxu1 %v942_v57  ;;  %v900_v59 = vmul.f32 %v896_v33, %v892_v27 }
 0x2fd   : > { %2270 = vmatprep.mubr.f32.mxu1 %v907_v58  ;;  %2269 = vmatpush3.xpose.msra.mxu1 %v942_v57 }
 0x2fe   : > { %v908_v60 = vadd.f32 %v904_v26, %v900_v59 }
 0x300   : > { %2271 = vmatmul.mubr.f32.vlgmr.msra.gmra.mxu1 %v908_v60 }
 0x377   : > { %v954_v61 = vpop.xlane.xlu0 %953 }
 0x378   : > { %v957_v40 = vmul.f32 0.0078125, %v954_v61 }
 0x37a   : > { %v959_v62 = vadd.f32 1e-05, %v957_v40 }
 0x37b   : > { %v956_v63 = vpop.xlane.xlu1 %955 }
 0x37c   : > { %2406 = vrsqrt.f32 %v959_v62  ;;  %v958_v45 = vmul.f32 0.0078125, %v956_v63 }
 0x37e   : > { %v960_v0 = vadd.f32 1e-05, %v958_v45 }
 0x380   : > { %2408 = vrsqrt.f32 %v960_v0 }
 0x389   : > { %v2407_v6 = vpop.eup %2406 }
 0x38a   : > { %v963_v8 = vmul.f32 %v2407_v6, %v949_v16 }
 0x38c   : > { %v969_v10 = vmul.f32 %v968_v49, %v963_v8 }
 0x38d   : > { %v2409_v11 = vpop.eup %2408 }
 0x38e   : > { %v975_v13 = vadd.f32 %v974_v9, %v969_v10  ;;  %v964_v14 = vmul.f32 %v2409_v11, %v950_v24 }
 0x390   : > { %2273 = vmatprep.subr.mxu1 %v975_v13  ;;  %v970_v15 = vmul.f32 %v968_v49, %v964_v14 }
 0x391   : > { %2274 = vmatpush3.msra.mxu1 %v975_v13 }
 0x392   : > { %v3231_v18 = vadd.f32 %v974_v9, %v970_v15 }
 0x394   : > { %2278 = vmatprep.subr.mxu1 %v3231_v18 }
 0x3b9   : > { %v2267_v19 = vpop.f32.mrf.mxu1 }
 0x3ba   : > { %v1129_v5 = vsel %vm1127_vm0, %v2267_v19, -inf }
 0x3bb   : > { %v1043_v20 = vpop.f32.mrf.mxu1 }
 0x3bc   : > { %v1128_v16 = vsel %vm1127_vm0, %v1043_v20, -inf }
 0x3bd   : > { %v1130_v21 = vmax.f32 %v1128_v16, %v1129_v5 }
 0x3bf   : > { %v1131_v23 = vrot.slane %v1130_v21, 4 }
 0x3c0   : > { %v2272_v25 = vpop.f32.mrf.mxu1 }
 0x3c1   : > { %v1132_v28 = vmax.f32 %v1130_v21, %v1131_v23  ;;  %v1138_v32 = vsel %vm1127_vm0, %v2272_v25, -inf }
 0x3c2   : > { %v1118_v31 = vpop.f32.mrf.mxu1 }
 0x3c3   : > { %v1133_v24 = vrot.slane %v1132_v28, 2  ;;  %v1137_v33 = vsel %vm1127_vm0, %v1118_v31, -inf }
 0x3c4   : > { %v1139_v37 = vmax.f32 %v1137_v33, %v1138_v32 }
 0x3c5   : > { %v1134_v38 = vmax.f32 %v1132_v28, %v1133_v24 }
 0x3c6   : > { %v1140_v39 = vrot.slane %v1139_v37, 4 }
 0x3c7   : > { %v1135_v42 = vrot.slane %v1134_v38, 1 }
 0x3c8   : > { %v1141_v26 = vmax.f32 %v1139_v37, %v1140_v39 }
 0x3c9   : > { %v1136_v43 = vmax.f32 %v1134_v38, %v1135_v42 }
 0x3ca   : > { %v1142_v44 = vrot.slane %v1141_v26, 2 }
 0x3cb   : > { %v1146_v46 = vsub.f32 %v1043_v20, %v1136_v43  ;;  %v1147_v48 = vsub.f32 %v2267_v19, %v1136_v43 }
 0x3cc   : > { %v1143_v50 = vmax.f32 %v1141_v26, %v1142_v44 }
 0x3cd   : > { %v1150_v51 = vmul.f32 1.442695, %v1146_v46  ;;  %v1152_v52 = vmul.f32 1.442695, %v1147_v48 }
 0x3ce   : > { %v1144_v53 = vrot.slane %v1143_v50, 1 }
 0x3cf   : > { %2410 = vpow2.f32 %v1150_v51 }
 0x3d0   : > { %2412 = vpow2.f32 %v1152_v52  ;;  %v1145_v54 = vmax.f32 %v1143_v50, %v1144_v53 }
 0x3d2   : > { %v1148_v34 = vsub.f32 %v1118_v31, %v1145_v54  ;;  %v1149_v55 = vsub.f32 %v2272_v25, %v1145_v54 }
 0x3d4   : > { %v1154_v56 = vmul.f32 1.442695, %v1148_v34  ;;  %v1156_v57 = vmul.f32 1.442695, %v1149_v55 }
 0x3d6   : > { %2414 = vpow2.f32 %v1154_v56 }
 0x3d7   : > { %2416 = vpow2.f32 %v1156_v57 }
 0x3dc   : > { %v2411_v27 = vpop.eup %2410 }
 0x3dd   : > { %v2413_v58 = vpop.eup %2412  ;;  %v1158_v59 = vsel %vm1127_vm0, %v2411_v27, 0.0 }
 0x3de   : > { %v1159_v60 = vsel %vm1127_vm0, %v2413_v58, 0.0 }
 0x3df   : > { %v1160_v61 = vadd.f32 %v1159_v60, %v1158_v59 }
 0x3e1   : > { %v1161_v40 = vrot.slane %v1160_v61, 4 }
 0x3e3   : > { %v2415_v62 = vpop.eup %2414  ;;  %v1162_v63 = vadd.f32 %v1161_v40, %v1160_v61 }
 0x3e4   : > { %v2417_v45 = vpop.eup %2416  ;;  %v1167_v0 = vsel %vm1127_vm0, %v2415_v62, 0.0 }
 0x3e5   : > { %v1163_v49 = vrot.slane %v1162_v63, 2  ;;  %v1168_v6 = vsel %vm1127_vm0, %v2417_v45, 0.0 }
 0x3e6   : > { %v1169_v8 = vadd.f32 %v1168_v6, %v1167_v0 }
 0x3e7   : > { %v1164_v9 = vadd.f32 %v1163_v49, %v1162_v63  ;;  %v1391_v49 = vrot.slane %v3224_v2, %v3169_v7 }
 0x3e8   : > { %v1170_v10 = vrot.slane %v1169_v8, 4 }
 0x3e9   : > { %v1165_v11 = vrot.slane %v1164_v9, 1 }
 0x3ea   : > { %v1171_v13 = vadd.f32 %v1170_v10, %v1169_v8  ;;  %v1399_v8 = vrot.slane %v3224_v2, %v771_v36 }
 0x3eb   : > { %v1166_v14 = vadd.f32 %v1165_v11, %v1164_v9 }
 0x3ec   : > { %v1172_v15 = vrot.slane %v1171_v13, 2 }
 0x3ed   : > { %2418 = vrcp.f32 %v1166_v14 }
 0x3ee   : > { %v1173_v19 = vadd.f32 %v1172_v15, %v1171_v13 }
 0x3f0   : > { %v1174_v20 = vrot.slane %v1173_v19, 1 }
 0x3f2   : > { %v1175_v5 = vadd.f32 %v1174_v20, %v1173_v19 }
 0x3f4   : > { %2420 = vrcp.f32 %v1175_v5 }
 0x3fa   : > { %v2419_v16 = vpop.eup %2418 }
 0x3fb   : > { %v1178_v21 = vmul.f32 %v2419_v16, %v2411_v27  ;;  %v1179_v23 = vmul.f32 %v2419_v16, %v2413_v58 }
 0x3fd   : > { %2275 = vmatprep.mubr.msk.f32.mxu1 %vm1127_vm0, %v1178_v21 }
 0x3fe   : > { %2276 = vmatmul.mubr.msk.f32.vlgmr.msra.gmra.mxu1 %vm1127_vm0, %v1179_v23 }
 0x3ff   : > { %2279 = vmatpush3.msra.mxu1 %v3231_v18 }
 0x401   : > { %v2421_v25 = vpop.eup %2420 }
 0x402   : > { %v1180_v28 = vmul.f32 %v2421_v25, %v2415_v62  ;;  %v1181_v31 = vmul.f32 %v2421_v25, %v2417_v45 }
 0x404   : > { %2280 = vmatprep.mubr.msk.f32.mxu1 %vm1127_vm0, %v1180_v28 }
 0x405   : > { %2281 = vmatmul.mubr.msk.f32.vlgmr.msra.gmra.mxu1 %vm1127_vm0, %v1181_v31 }
 0x4be   : > { %v2277_v24 = vpop.f32.mrf.mxu1 }
 0x4bf   : > { %1346 = vadd.xlane.f32.xlu1 %v2277_v24 }
 0x4c0   : > { %v1254_v32 = vpop.f32.mrf.mxu1 }
 0x4c1   : > { %1344 = vadd.xlane.f32.xlu0 %v1254_v32 }
 0x4c5   : > { %v2282_v33 = vpop.f32.mrf.mxu1 }
 0x4c6   : > { %1350 = vadd.xlane.f32.xlu1 %v2282_v33 }
 0x4c7   : > { %v1335_v37 = vpop.f32.mrf.mxu1 }
 0x4c8   : > { %1348 = vadd.xlane.f32.xlu0 %v1335_v37 }
 0x548   : > { %v1347_v38 = vpop.xlane.xlu1 %1346 }
 0x549   : > { %v1353_v39 = vmul.f32 0.0078125, %v1347_v38 }
 0x54a   : > { %v1345_v42 = vpop.xlane.xlu0 %1344 }
 0x54b   : > { %v1357_v26 = vsub.f32 %v2277_v24, %v1353_v39  ;;  %v1352_v18 = vmul.f32 0.0078125, %v1345_v42 }
 0x54d   : > { %v1356_v43 = vsub.f32 %v1254_v32, %v1352_v18  ;;  %v1361_v44 = vmul.f32 %v1357_v26, %v1357_v26  ;;  %v1501_v18 = vld [vmem:[#allocation11 + $0xe8] sm:$0xff] }
 0x54f   : > { %1366 = vadd.xlane.f32.xlu1 %v1361_v44  ;;  %v1351_v46 = vpop.xlane.xlu1 %1350  ;;  %v1360_v48 = vmul.f32 %v1356_v43, %v1356_v43  ;;  %v1499_v44 = vld [vmem:[#allocation11 + $0xd8] sm:$0xff] }
 0x550   : > { %v1355_v50 = vmul.f32 0.0078125, %v1351_v46 }
 0x551   : > { %1364 = vadd.xlane.f32.xlu0 %v1360_v48  ;;  %v1349_v51 = vpop.xlane.xlu0 %1348 }
 0x552   : > { %v1359_v52 = vsub.f32 %v2282_v33, %v1355_v50  ;;  %v1354_v53 = vmul.f32 0.0078125, %v1349_v51 }
 0x554   : > { %v1358_v54 = vsub.f32 %v1335_v37, %v1354_v53  ;;  %v1363_v34 = vmul.f32 %v1359_v52, %v1359_v52 }
 0x556   : > { %1370 = vadd.xlane.f32.xlu1 %v1363_v34  ;;  %v1362_v55 = vmul.f32 %v1358_v54, %v1358_v54 }
 0x558   : > { %1368 = vadd.xlane.f32.xlu0 %v1362_v55 }
 0x5d8   : > { %v1367_v56 = vpop.xlane.xlu1 %1366 }
 0x5d9   : > { %v1373_v57 = vmul.f32 0.0078125, %v1367_v56 }
 0x5da   : > { %v1365_v27 = vpop.xlane.xlu0 %1364 }
 0x5db   : > { %v1377_v58 = vadd.f32 1e-05, %v1373_v57  ;;  %v1372_v59 = vmul.f32 0.0078125, %v1365_v27 }
 0x5dd   : > { %2422 = vrsqrt.f32 %v1377_v58  ;;  %v1376_v60 = vadd.f32 1e-05, %v1372_v59 }
 0x5df   : > { %2424 = vrsqrt.f32 %v1376_v60  ;;  %v1371_v61 = vpop.xlane.xlu1 %1370  ;;  %v1497_v60 = vld [vmem:[#allocation11 + $0xc8] sm:$0xff] }
 0x5e0   : > { %v1375_v40 = vmul.f32 0.0078125, %v1371_v61  ;;  %v1496_v61 = vld [vmem:[#allocation11 + $0xc0] sm:$0xff] }
 0x5e1   : > { %v1369_v62 = vpop.xlane.xlu0 %1368 }
 0x5e2   : > { %v1379_v63 = vadd.f32 1e-05, %v1375_v40  ;;  %v1374_v45 = vmul.f32 0.0078125, %v1369_v62  ;;  %v1495_v40 = vld [vmem:[#allocation11 + $0xb8] sm:$0xff]  ;;  %v1494_v62 = vld [vmem:[#allocation11 + $0xb0] sm:$0xff] }
 0x5e4   : > { %2426 = vrsqrt.f32 %v1379_v63  ;;  %v1378_v0 = vadd.f32 1e-05, %v1374_v45  ;;  %v1493_v63 = vld [vmem:[#allocation11 + $0xa8] sm:$0xff]  ;;  %v1492_v45 = vld [vmem:[#allocation11 + $0xa0] sm:$0xff] }
 0x5e6   : > { %2428 = vrsqrt.f32 %v1378_v0  ;;  %v1491_v0 = vld [vmem:[#allocation11 + $0x98] sm:$0xff] }
 0x5ea   : > { %v2423_v6 = vpop.eup %2422 }
 0x5eb   : > { %v1385_v9 = vmul.f32 %v2423_v6, %v1357_v26  ;;  %v1503_v26 = vld [vmem:[#allocation11 + $0xf8] sm:$0xff]  ;;  %v1489_v6 = vld [vmem:[#allocation11 + $0x88] sm:$0xff] }
 0x5ec   : > { %v2425_v10 = vpop.eup %2424  ;;  %1516 = vmatprep.subr.mxu1 %v1503_v26  ;;  %v1641_v26 = vld [vmem:[#allocation13 + $0xe0] sm:$0xff] }
 0x5ed   : > { %v1393_v11 = vmul.f32 %v1391_v49, %v1385_v9  ;;  %v1384_v13 = vmul.f32 %v2425_v10, %v1356_v43  ;;  %v1500_v43 = vld [vmem:[#allocation11 + $0xe0] sm:$0xff]  ;;  %v1487_v9 = vld [vmem:[#allocation11 + $0x78] sm:$0xff]  ;;  %v1486_v10 = vld [vmem:[#allocation11 + $0x70] sm:$0xff] }
 0x5ef   : > { %v1401_v14 = vadd.f32 %v1399_v8, %v1393_v11  ;;  %v1392_v15 = vmul.f32 %v1391_v49, %v1384_v13  ;;  %v1485_v11 = vld [vmem:[#allocation11 + $0x68] sm:$0xff]  ;;  %v1484_v13 = vld [vmem:[#allocation11 + $0x60] sm:$0xff] }
 0x5f1   : > { %v2427_v19 = vpop.eup %2426  ;;  %v1405_v20 = vmax.f32 %v1401_v14, 0.0  ;;  %v1400_v5 = vadd.f32 %v1399_v8, %v1392_v15  ;;  %v1483_v14 = vld [vmem:[#allocation11 + $0x58] sm:$0xff]  ;;  %v1482_v15 = vld [vmem:[#allocation11 + $0x50] sm:$0xff] }
 0x5f2   : > { %v1387_v16 = vmul.f32 %v2427_v19, %v1359_v52  ;;  %v1481_v19 = vld [vmem:[#allocation11 + $0x48] sm:$0xff] }
 0x5f3   : > { %v2429_v21 = vpop.eup %2428  ;;  %v1409_v23 = vadd.f32 %v1405_v20, %v3138_v35  ;;  %v1404_v25 = vmax.f32 %v1400_v5, 0.0  ;;  %v1502_v35 = vld [vmem:[#allocation11 + $0xf0] sm:$0xff]  ;;  %v2762_v20 = vmov 0.0   ;;  %v1480_v5 = vld [vmem:[#allocation11 + $0x40] sm:$0xff] }
 0x5f4   : > { %v1395_v28 = vmul.f32 %v1391_v49, %v1387_v16  ;;  %v1386_v31 = vmul.f32 %v2429_v21, %v1358_v54  ;;  %1517 = vmatpush1.msra.mxu1 %v1502_v35  ;;  %1580 = vmatprep.mubr.f32.mxu1 %v2762_v20  ;;  %v1479_v16 = vld [vmem:[#allocation11 + $0x38] sm:$0xff]  ;;  %v1478_v21 = vld [vmem:[#allocation11 + $0x30] sm:$0xff]  ;;  %v1625_v35 = vld [vmem:[#allocation13 + $0x60] sm:$0xff] }
 0x5f5   : > { %1414 = vadd.xlane.f32.xlu1 %v1409_v23  ;;  %v1408_v24 = vadd.f32 %v1404_v25, %v3132_v30  ;;  %1518 = vmatprep.subr.mxu1 %v1501_v18  ;;  %v1498_v30 = vld [vmem:[#allocation11 + $0xd0] sm:$0xff]  ;;  %v1476_v25 = vld [vmem:[#allocation11 + $0x20] sm:$0xff]  ;;  %v1640_v18 = vld [vmem:[#allocation13 + $0xd8] sm:$0xff] }
 0x5f6   : > { %v1403_v36 = vadd.f32 %v1399_v8, %v1395_v28  ;;  %v1394_v32 = vmul.f32 %v1391_v49, %v1386_v31  ;;  %1519 = vmatpush1.msra.mxu1 %v1500_v43  ;;  %v1490_v49 = vld [vmem:[#allocation11 + $0x90] sm:$0xff]  ;;  %v1475_v28 = vld [vmem:[#allocation11 + $0x18] sm:$0xff] }
 0x5f7   : > { %1412 = vadd.xlane.f32.xlu0 %v1408_v24  ;;  %1520 = vmatprep.subr.mxu1 %v1499_v44  ;;  %v1474_v31 = vld [vmem:[#allocation11 + $0x10] sm:$0xff]  ;;  %v1624_v43 = vld [vmem:[#allocation13 + $0x58] sm:$0xff] }
 0x5f8   : > { %v1407_v33 = vmax.f32 %v1403_v36, 0.0  ;;  %v1402_v37 = vadd.f32 %v1399_v8, %v1394_v32  ;;  %1521 = vmatpush1.msra.mxu1 %v1498_v30  ;;  %v1488_v8 = vld [vmem:[#allocation11 + $0x80] sm:$0xff]  ;;  %v1644_v32 = vld [vmem:[#allocation13 + $0xf8] sm:$0xff]  ;;  %v1639_v44 = vld [vmem:[#allocation13 + $0xd0] sm:$0xff] }
 0x5f9   : > { %1522 = vmatprep.subr.mxu1 %v1497_v60  ;;  %v1472_v36 = vld [vmem:[#allocation11] sm:$0xff]  ;;  %2111 = vmatprep.subr.mxu0 %v1644_v32  ;;  %v1623_v30 = vld [vmem:[#allocation13 + $0x50] sm:$0xff]  ;;  %v1616_v32 = vld [vmem:[#allocation13 + $0x18] sm:$0xff] }
 0x5fa   : > { %v1411_v38 = vadd.f32 %v1407_v33, %v3154_v47  ;;  %v1406_v39 = vmax.f32 %v1402_v37, 0.0  ;;  %1523 = vmatpush1.msra.mxu1 %v1496_v61  ;;  %v1628_v33 = vld [vmem:[#allocation13 + $0x78] sm:$0xff]  ;;  %v1643_v37 = vld [vmem:[#allocation13 + $0xf0] sm:$0xff] }
 0x5fb   : > { %1524 = vmatprep.subr.mxu1 %v1495_v40  ;;  %2112 = vmatpush3.msra.mxu0 %v1628_v33  ;;  %v1615_v33 = vld [vmem:[#allocation13 + $0x10] sm:$0xff] }
 0x5fc   : > { %1418 = vadd.xlane.f32.xlu1 %v1411_v38  ;;  %v1410_v42 = vadd.f32 %v1406_v39, %v3147_v41  ;;  %1525 = vmatpush1.msra.mxu1 %v1494_v62  ;;  %v1642_v39 = vld [vmem:[#allocation13 + $0xe8] sm:$0xff] }
 0x5fd   : > { %1526 = vmatprep.subr.mxu1 %v1493_v63  ;;  %2113 = vmatprep.subr.mxu0 %v1643_v37  ;;  %v1630_v37 = vld [vmem:[#allocation13 + $0x88] sm:$0xff] }
 0x5fe   : > { %1416 = vadd.xlane.f32.xlu0 %v1410_v42  ;;  %1527 = vmatpush1.msra.mxu1 %v1492_v45 }
 0x5ff   : > { %1528 = vmatprep.subr.mxu1 %v1491_v0 }
 0x600   : > { %1529 = vmatpush1.msra.mxu1 %v1490_v49 }
 0x601   : > { %1530 = vmatprep.subr.mxu1 %v1489_v6 }
 0x602   : > { %1531 = vmatpush1.msra.mxu1 %v1488_v8 }
 0x603   : > { %1532 = vmatprep.subr.mxu1 %v1487_v9 }
 0x604   : > { %1533 = vmatpush1.msra.mxu1 %v1486_v10 }
 0x605   : > { %1534 = vmatprep.subr.mxu1 %v1485_v11 }
 0x606   : > { %1535 = vmatpush1.msra.mxu1 %v1484_v13 }
 0x607   : > { %1536 = vmatprep.subr.mxu1 %v1483_v14 }
 0x608   : > { %1537 = vmatpush1.msra.mxu1 %v1482_v15  ;;  %v1459_v15 = vrot.slane %v3224_v2, %v895_v22 }
 0x609   : > { %1538 = vmatprep.subr.mxu1 %v1481_v19 }
 0x60a   : > { %1539 = vmatpush1.msra.mxu1 %v1480_v5 }
 0x60b   : > { %1540 = vmatprep.subr.mxu1 %v1479_v16  ;;  %v1467_v16 = vrot.slane %v3224_v2, %v903_v29 }
 0x60c   : > { %1541 = vmatpush1.msra.mxu1 %v1478_v21 }
 0x67e   : > { %v1415_v46 = vpop.xlane.xlu1 %1414 }
 0x67f   : > { %v1421_v48 = vmul.f32 0.0078125, %v1415_v46  ;;  %v1638_v46 = vld [vmem:[#allocation13 + $0xc8] sm:$0xff] }
 0x680   : > { %v1413_v47 = vpop.xlane.xlu0 %1412 }
 0x681   : > { %v3256_v50 = vsub.f32 %v1409_v23, %v1421_v48  ;;  %v1420_v51 = vmul.f32 0.0078125, %v1413_v47  ;;  %v1477_v23 = vld [vmem:[#allocation11 + $0x28] sm:$0xff]  ;;  %v1637_v47 = vld [vmem:[#allocation13 + $0xc0] sm:$0xff] }
 0x682   : > { %1542 = vmatprep.subr.mxu1 %v1477_v23  ;;  %v1622_v48 = vld [vmem:[#allocation13 + $0x48] sm:$0xff] }
 0x683   : > { %v3258_v41 = vsub.f32 %v1408_v24, %v1420_v51  ;;  %v1429_v52 = vmul.f32 %v3256_v50, %v3256_v50  ;;  %1543 = vmatpush1.msra.mxu1 %v1476_v25  ;;  %v1473_v24 = vld [vmem:[#allocation11 + $0x8] sm:$0xff]  ;;  %v1621_v51 = vld [vmem:[#allocation13 + $0x40] sm:$0xff] }
 0x684   : > { %1544 = vmatprep.subr.mxu1 %v1475_v28 }
 0x685   : > { %1434 = vadd.xlane.f32.xlu1 %v1429_v52  ;;  %v1419_v53 = vpop.xlane.xlu1 %1418  ;;  %v1428_v54 = vmul.f32 %v3258_v41, %v3258_v41  ;;  %1545 = vmatpush1.msra.mxu1 %v1474_v31  ;;  %v1636_v52 = vld [vmem:[#allocation13 + $0xb8] sm:$0xff] }
 0x686   : > { %v1423_v34 = vmul.f32 0.0078125, %v1419_v53  ;;  %1546 = vmatprep.subr.mxu1 %v1473_v24  ;;  %v1620_v53 = vld [vmem:[#allocation13 + $0x38] sm:$0xff] }
 0x687   : > { %1432 = vadd.xlane.f32.xlu0 %v1428_v54  ;;  %v1417_v55 = vpop.xlane.xlu0 %1416  ;;  %1547 = vmatpush1.msra.mxu1 %v1472_v36  ;;  %v1635_v54 = vld [vmem:[#allocation13 + $0xb0] sm:$0xff] }
 0x688   : > { %v3264_v56 = vsub.f32 %v1411_v38, %v1423_v34  ;;  %v1422_v57 = vmul.f32 0.0078125, %v1417_v55  ;;  %v1627_v38 = vld [vmem:[#allocation13 + $0x70] sm:$0xff]  ;;  %v1634_v55 = vld [vmem:[#allocation13 + $0xa8] sm:$0xff] }
 0x689   : > { %2114 = vmatpush3.msra.mxu0 %v1627_v38  ;;  %v1619_v34 = vld [vmem:[#allocation13 + $0x30] sm:$0xff]  ;;  %v1614_v38 = vld [vmem:[#allocation13 + $0x8] sm:$0xff] }
 0x68a   : > { %v3266_v27 = vsub.f32 %v1410_v42, %v1422_v57  ;;  %v1431_v58 = vmul.f32 %v3264_v56, %v3264_v56  ;;  %v1626_v42 = vld [vmem:[#allocation13 + $0x68] sm:$0xff]  ;;  %2115 = vmatprep.subr.mxu0 %v1642_v39  ;;  %v1629_v39 = vld [vmem:[#allocation13 + $0x80] sm:$0xff] }
 0x68b   : > { %2116 = vmatpush3.msra.mxu0 %v1626_v42  ;;  %v1618_v57 = vld [vmem:[#allocation13 + $0x28] sm:$0xff]  ;;  %v1613_v42 = vld [vmem:[#allocation13] sm:$0xff] }
 0x68c   : > { %1438 = vadd.xlane.f32.xlu1 %v1431_v58  ;;  %v1430_v59 = vmul.f32 %v3266_v27, %v3266_v27  ;;  %2117 = vmatprep.subr.mxu0 %v1641_v26  ;;  %v1633_v58 = vld [vmem:[#allocation13 + $0xa0] sm:$0xff] }
 0x68d   : > { %2118 = vmatpush3.msra.mxu0 %v1625_v35 }
 0x68e   : > { %1436 = vadd.xlane.f32.xlu0 %v1430_v59  ;;  %2119 = vmatprep.subr.mxu0 %v1640_v18  ;;  %v1617_v59 = vld [vmem:[#allocation13 + $0x20] sm:$0xff] }
 0x68f   : > { %2120 = vmatpush3.msra.mxu0 %v1624_v43 }
 0x690   : > { %2121 = vmatprep.subr.mxu0 %v1639_v44 }
 0x691   : > { %2122 = vmatpush3.msra.mxu0 %v1623_v30 }
 0x692   : > { %2123 = vmatprep.subr.mxu0 %v1638_v46 }
 0x693   : > { %2124 = vmatpush3.msra.mxu0 %v1622_v48 }
 0x694   : > { %2125 = vmatprep.subr.mxu0 %v1637_v47 }
 0x695   : > { %2126 = vmatpush3.msra.mxu0 %v1621_v51 }
 0x696   : > { %2127 = vmatprep.subr.mxu0 %v1636_v52 }
 0x697   : > { %2128 = vmatpush3.msra.mxu0 %v1620_v53 }
 0x698   : > { %2129 = vmatprep.subr.mxu0 %v1635_v54 }
 0x699   : > { %2130 = vmatpush3.msra.mxu0 %v1619_v34 }
 0x69a   : > { %2131 = vmatprep.subr.mxu0 %v1634_v55 }
 0x69b   : > { %2132 = vmatpush3.msra.mxu0 %v1618_v57 }
 0x69c   : > { %2133 = vmatprep.subr.mxu0 %v1633_v58 }
 0x69d   : > { %2134 = vmatpush3.msra.mxu0 %v1617_v59 }
 0x70e   : > { %v1435_v60 = vpop.xlane.xlu1 %1434 }
 0x70f   : > { %v1441_v61 = vmul.f32 0.0078125, %v1435_v60 }
 0x710   : > { %v1433_v40 = vpop.xlane.xlu0 %1432 }
 0x711   : > { %v1445_v62 = vadd.f32 1e-05, %v1441_v61  ;;  %v1440_v63 = vmul.f32 0.0078125, %v1433_v40 }
 0x713   : > { %2430 = vrsqrt.f32 %v1445_v62  ;;  %v1444_v45 = vadd.f32 1e-05, %v1440_v63 }
 0x715   : > { %2432 = vrsqrt.f32 %v1444_v45  ;;  %v1439_v0 = vpop.xlane.xlu1 %1438 }
 0x716   : > { %v1443_v49 = vmul.f32 0.0078125, %v1439_v0 }
 0x717   : > { %v1437_v6 = vpop.xlane.xlu0 %1436 }
 0x718   : > { %v1447_v8 = vadd.f32 1e-05, %v1443_v49  ;;  %v1442_v9 = vmul.f32 0.0078125, %v1437_v6  ;;  %v1648_v49 = vrot.slane %v3224_v2, %v967_v1 }
 0x71a   : > { %v1446_v10 = vadd.f32 1e-05, %v1442_v9  ;;  %2434 = vrsqrt.f32 %v1447_v8 }
 0x71c   : > { %2436 = vrsqrt.f32 %v1446_v10 }
 0x720   : > { %v2431_v11 = vpop.eup %2430 }
 0x721   : > { %v1453_v19 = vmul.f32 %v2431_v11, %v3256_v50 }
 0x722   : > { %v2433_v13 = vpop.eup %2432 }
 0x723   : > { %v1452_v14 = vmul.f32 %v2433_v13, %v3258_v41  ;;  %v1461_v23 = vmul.f32 %v1459_v15, %v1453_v19 }
 0x725   : > { %v1460_v5 = vmul.f32 %v1459_v15, %v1452_v14  ;;  %v3286_v31 = vadd.f32 %v1467_v16, %v1461_v23 }
 0x727   : > { %v3281_v21 = vadd.f32 %v1467_v16, %v1460_v5  ;;  %v2435_v25 = vpop.eup %2434 }
 0x728   : > { %v1455_v22 = vmul.f32 %v2435_v25, %v3264_v56  ;;  %v1631_v56 = vld [vmem:[#allocation13 + $0x90] sm:$0xff] }
 0x729   : > { %v2437_v28 = vpop.eup %2436  ;;  %1581 = vmatmul.mubr.f32.vlgmr.msra.gmra.mxu1 %v3281_v21 }
 0x72a   : > { %1586 = vmatprep.mubr.f32.mxu1 %v2762_v20  ;;  %v1454_v41 = vmul.f32 %v2437_v28, %v3266_v27  ;;  %v1463_v24 = vmul.f32 %v1459_v15, %v1455_v22  ;;  %v1632_v27 = vld [vmem:[#allocation13 + $0x98] sm:$0xff] }
 0x72b   : > { %2135 = vmatprep.subr.mxu0 %v1632_v27 }
 0x72c   : > { %v1462_v50 = vmul.f32 %v1459_v15, %v1454_v41  ;;  %v3295_v36 = vadd.f32 %v1467_v16, %v1463_v24  ;;  %2136 = vmatpush3.msra.mxu0 %v1616_v32 }
 0x72d   : > { %1587 = vmatmul.mubr.f32.gmra.mxu1 %v3286_v31  ;;  %2137 = vmatprep.subr.mxu0 %v1631_v56 }
 0x72e   : > { %1592 = vmatprep.mubr.f32.mxu1 %v2762_v20  ;;  %v3291_v29 = vadd.f32 %v1467_v16, %v1462_v50  ;;  %2138 = vmatpush3.msra.mxu0 %v1615_v33 }
 0x72f   : > { %2139 = vmatprep.subr.mxu0 %v1630_v37 }
 0x730   : > { %2140 = vmatpush3.msra.mxu0 %v1614_v38 }
 0x731   : > { %1593 = vmatmul.mubr.f32.gmra.mxu1 %v3291_v29  ;;  %2141 = vmatprep.subr.mxu0 %v1629_v39 }
 0x732   : > { %1598 = vmatprep.mubr.f32.mxu1 %v2762_v20  ;;  %2142 = vmatpush3.msra.mxu0 %v1613_v42  ;;  %v1504_v20 = vld [vmem:[%s3438_s26] sm:$0x3] }
 0x733   : > { %v1509_v26 = vrot.slane %v1504_v20, %v3162_v4  ;;  %v1513_v35 = vrot.slane %v1504_v20, %v3169_v7 }
 0x735   : > { %1599 = vmatmul.mubr.f32.gmra.mxu1 %v3295_v36 }
 0x7e9   : > { %v1582_v18 = vpop.f32.mrf.mxu1 }
 0x7ea   : > { %v1583_v43 = vadd.f32 %v1582_v18, %v1509_v26 }
 0x7eb   : > { %v1584_v44 = vpop.f32.mrf.mxu1 }
 0x7ec   : > { %v1585_v30 = vadd.f32 %v1584_v44, %v1513_v35  ;;  %v1605_v47 = vmax.f32 %v1583_v43, 0.0 }
 0x7ed   : > { %v1588_v46 = vpop.f32.mrf.mxu1 }
 0x7ee   : > { %v1606_v48 = vmax.f32 %v1585_v30, 0.0  ;;  %v1589_v51 = vadd.f32 %v1588_v46, %v1509_v26 }
 0x7ef   : > { %v1590_v52 = vpop.f32.mrf.mxu1 }
 0x7f0   : > { %v1591_v53 = vadd.f32 %v1590_v52, %v1513_v35  ;;  %1713 = vmatprep.mubr.f32.mxu0 %v1606_v48  ;;  %v1607_v55 = vmax.f32 %v1589_v51, 0.0 }
 0x7f1   : > { %v1594_v54 = vpop.f32.mrf.mxu1  ;;  %1714 = vmatmul.mubr.f32.vlgmr.msra.gmra.mxu0 %v1605_v47 }
 0x7f2   : > { %v1608_v34 = vmax.f32 %v1591_v53, 0.0  ;;  %v1595_v57 = vadd.f32 %v1594_v54, %v1509_v26 }
 0x7f3   : > { %v1596_v58 = vpop.f32.mrf.mxu1 }
 0x7f4   : > { %v1597_v4 = vadd.f32 %v1596_v58, %v1513_v35  ;;  %1718 = vmatprep.mubr.f32.mxu0 %v1608_v34  ;;  %v1609_v60 = vmax.f32 %v1595_v57, 0.0  ;;  %v1785_v57 = vrot.slane %v3224_v2, %v933_v12 }
 0x7f5   : > { %v1600_v7 = vpop.f32.mrf.mxu1  ;;  %1719 = vmatmul.mubr.f32.gmra.mxu0 %v1607_v55 }
 0x7f6   : > { %v1610_v59 = vmax.f32 %v1597_v4, 0.0  ;;  %v1601_v61 = vadd.f32 %v1600_v7, %v1509_v26  ;;  %v1793_v4 = vrot.slane %v3224_v2, %v939_v17 }
 0x7f7   : > { %v1602_v40 = vpop.f32.mrf.mxu1 }
 0x7f8   : > { %v1603_v62 = vadd.f32 %v1602_v40, %v1513_v35  ;;  %1723 = vmatprep.mubr.f32.mxu0 %v1610_v59  ;;  %v1611_v45 = vmax.f32 %v1601_v61, 0.0 }
 0x7f9   : > { %1724 = vmatmul.mubr.f32.gmra.mxu0 %v1609_v60 }
 0x7fa   : > { %v1612_v63 = vmax.f32 %v1603_v62, 0.0 }
 0x7fc   : > { %1728 = vmatprep.mubr.f32.mxu0 %v1612_v63 }
 0x7fd   : > { %1729 = vmatmul.mubr.f32.gmra.mxu0 %v1611_v45 }
 0x8b1   : > { %v2143_v0 = vpop.f32.mrf.mxu0 }
 0x8b3   : > { %v2144_v6 = vpop.f32.mrf.mxu0 }
 0x8b4   : > { %v2145_v8 = vadd.f32 %v2144_v6, %v2143_v0 }
 0x8b5   : > { %v2146_v9 = vpop.f32.mrf.mxu0 }
 0x8b6   : > { %v1716_v10 = vadd.f32 %v2145_v8, %v1648_v49 }
 0x8b7   : > { %v2147_v11 = vpop.f32.mrf.mxu0 }
 0x8b8   : > { %v2148_v13 = vadd.f32 %v2147_v11, %v2146_v9  ;;  %v1734_v14 = vadd.f32 %v1716_v10, %v3281_v21 }
 0x8b9   : > { %v2149_v15 = vpop.f32.mrf.mxu0 }
 0x8ba   : > { %v1721_v19 = vadd.f32 %v2148_v13, %v1648_v49  ;;  %1738 = vadd.xlane.f32.xlu0 %v1734_v14 }
 0x8bb   : > { %v2150_v5 = vpop.f32.mrf.mxu0 }
 0x8bc   : > { %v2151_v16 = vadd.f32 %v2150_v5, %v2149_v15  ;;  %v1735_v23 = vadd.f32 %v1721_v19, %v3286_v31 }
 0x8bd   : > { %v2152_v25 = vpop.f32.mrf.mxu0 }
 0x8be   : > { %v1726_v28 = vadd.f32 %v2151_v16, %v1648_v49  ;;  %1740 = vadd.xlane.f32.xlu1 %v1735_v23 }
 0x8bf   : > { %v2153_v41 = vpop.f32.mrf.mxu0 }
 0x8c0   : > { %v2154_v1 = vadd.f32 %v2153_v41, %v2152_v25  ;;  %v1736_v22 = vadd.f32 %v1726_v28, %v3291_v29 }
 0x8c2   : > { %v1731_v50 = vadd.f32 %v2154_v1, %v1648_v49  ;;  %1742 = vadd.xlane.f32.xlu0 %v1736_v22 }
 0x8c4   : > { %v1737_v24 = vadd.f32 %v1731_v50, %v3295_v36 }
 0x8c6   : > { %1744 = vadd.xlane.f32.xlu1 %v1737_v24 }
 0x943   : > { %v1739_v21 = vpop.xlane.xlu0 %1738 }
 0x944   : > { %v1746_v27 = vmul.f32 0.0078125, %v1739_v21 }
 0x946   : > { %v1750_v32 = vsub.f32 %v1734_v14, %v1746_v27 }
 0x947   : > { %v1741_v56 = vpop.xlane.xlu1 %1740 }
 0x948   : > { %v1747_v33 = vmul.f32 0.0078125, %v1741_v56  ;;  %v1754_v37 = vmul.f32 %v1750_v32, %v1750_v32 }
 0x94a   : > { %v1751_v38 = vsub.f32 %v1735_v23, %v1747_v33  ;;  %1758 = vadd.xlane.f32.xlu0 %v1754_v37 }
 0x94b   : > { %v1743_v31 = vpop.xlane.xlu0 %1742 }
 0x94c   : > { %v1748_v39 = vmul.f32 0.0078125, %v1743_v31  ;;  %v1755_v42 = vmul.f32 %v1751_v38, %v1751_v38 }
 0x94e   : > { %v1752_v20 = vsub.f32 %v1736_v22, %v1748_v39  ;;  %1760 = vadd.xlane.f32.xlu1 %v1755_v42 }
 0x94f   : > { %v1745_v26 = vpop.xlane.xlu1 %1744 }
 0x950   : > { %v1749_v29 = vmul.f32 0.0078125, %v1745_v26  ;;  %v1756_v35 = vmul.f32 %v1752_v20, %v1752_v20 }
 0x952   : > { %v1753_v18 = vsub.f32 %v1737_v24, %v1749_v29  ;;  %1762 = vadd.xlane.f32.xlu0 %v1756_v35 }
 0x954   : > { %v1757_v36 = vmul.f32 %v1753_v18, %v1753_v18 }
 0x956   : > { %1764 = vadd.xlane.f32.xlu1 %v1757_v36 }
 0x9d3   : > { %v1759_v43 = vpop.xlane.xlu0 %1758 }
 0x9d4   : > { %v1766_v44 = vmul.f32 0.0078125, %v1759_v43 }
 0x9d6   : > { %v1770_v30 = vadd.f32 1e-05, %v1766_v44 }
 0x9d7   : > { %v1761_v46 = vpop.xlane.xlu1 %1760 }
 0x9d8   : > { %2438 = vrsqrt.f32 %v1770_v30  ;;  %v1767_v48 = vmul.f32 0.0078125, %v1761_v46 }
 0x9da   : > { %v1771_v47 = vadd.f32 1e-05, %v1767_v48 }
 0x9db   : > { %v1763_v51 = vpop.xlane.xlu0 %1762 }
 0x9dc   : > { %2440 = vrsqrt.f32 %v1771_v47  ;;  %v1768_v52 = vmul.f32 0.0078125, %v1763_v51 }
 0x9de   : > { %v1772_v53 = vadd.f32 1e-05, %v1768_v52 }
 0x9df   : > { %v1765_v54 = vpop.xlane.xlu1 %1764 }
 0x9e0   : > { %2442 = vrsqrt.f32 %v1772_v53  ;;  %v1769_v34 = vmul.f32 0.0078125, %v1765_v54 }
 0x9e2   : > { %v1773_v55 = vadd.f32 1e-05, %v1769_v34 }
 0x9e4   : > { %2444 = vrsqrt.f32 %v1773_v55 }
 0x9e5   : > { %v2439_v58 = vpop.eup %2438 }
 0x9e6   : > { %v1778_v7 = vmul.f32 %v2439_v58, %v1750_v32 }
 0x9e8   : > { %v1786_v59 = vmul.f32 %v1785_v57, %v1778_v7 }
 0x9e9   : > { %v2441_v60 = vpop.eup %2440 }
 0x9ea   : > { %v1794_v61 = vadd.f32 %v1793_v4, %v1786_v59  ;;  %v1779_v40 = vmul.f32 %v2441_v60, %v1751_v38 }
 0x9ec   : > { %1798 = vst [vmem:[%s527_s30] sm:$0xff] %v1794_v61  ;;  %v1787_v62 = vmul.f32 %v1785_v57, %v1779_v40 }
 0x9ed   : > { %v2443_v63 = vpop.eup %2442 }
 0x9ee   : > { %v1795_v45 = vadd.f32 %v1793_v4, %v1787_v62  ;;  %v1780_v0 = vmul.f32 %v2443_v63, %v1752_v20 }
 0x9f0   : > { %1799 = vst [vmem:[%s527_s30 + $0x8] sm:$0xff] %v1795_v45  ;;  %v1788_v12 = vmul.f32 %v1785_v57, %v1780_v0 }
 0x9f1   : > { %v2445_v49 = vpop.eup %2444 }
 0x9f2   : > { %v1796_v3 = vadd.f32 %v1793_v4, %v1788_v12  ;;  %v1781_v6 = vmul.f32 %v2445_v49, %v1753_v18 }
 0x9f4   : > { %1800 = vst [vmem:[%s527_s30 + $0x10] sm:$0xff] %v1796_v3  ;;  %v1789_v17 = vmul.f32 %v1785_v57, %v1781_v6 }
 0x9f6   : > { %v1797_v2 = vadd.f32 %v1793_v4, %v1789_v17 }
 0x9f8   : > { %1801 = vst [vmem:[%s527_s30 + $0x18] sm:$0xff] %v1797_v2 }
 0x9f9   : > { %2675 = shalt.err (!%p2672_p1)
}
 0x9fa   : > { %s2676_s29 = scalar_lea.hbm %s3321_s6, 512  ;;  %s2680_s24 = scalar_lea.hbm %s3440_s5, 1024 }
 0x9fb   : > { %p2677_p0 = scmp.ne.s32.totalorder %s3321_s6, %s2676_s29  ;;  %p2681_p12 = scmp.lt.s32.totalorder %s3321_s6, %s3440_s5 }
 0x9fc   : > { %p2682_p9 = scmp.lt.s32.totalorder %s2680_s24, %s2676_s29 }
 0x9fd   : > { %p2678_p4 = pnand %p2677_p0, %p3441_p6 }
 0x9fe   : > { %p2683_p2 = por %p2682_p9, %p2681_p12 }
 0x9ff   : > { %p2679_p11 = pneg %p2678_p4 }
 0xa01   : > { %p2684_p8 = pnand %p2683_p2, %p2679_p11 }
 0xa03   : > { %2687 = shalt.err (!%p2684_p8)
}
 0xa04   : > { %s2764_s18 = smov 128   ;;  %s2765_s4 = smov 8  }
 0xa05   : > { %2307 = dma.vmem_to_hbm [thread:$0]  (%p3441_p6), %s3323_s21, 512, %s3321_s6, %s1803_s14, %s2764_s18, %s2764_s18, %s2765_s4  }
 0xa06 PF: > { %s3442_s15 = sld [smem:[#allocation24_spill]]  ;;  %p3445_p7 = scmp.ge.s32.totalorder %s2746_s12, 2 }
 0xa07   : > { %s3443_s0 = sld [smem:[#allocation26_spill]] }
 0xa0c   : > { %s1832_s26 = sand.u32 1, %s3442_s15  }
 0xa0d   : > { %p3444_p3 = scmp.ne.s32.totalorder %s3443_s0, 0  ;;  %s1833_s30 = scalar_lea.sflag [#allocation4], %s1832_s26 }
 0xa0f   : > { %p2336_p13 = pnand %p3445_p7, %p3444_p3 }
 0xa11   : > { %p2337_p5 = pneg %p2336_p13 }
 0xa13   : > { %2729 = dma.done.wait (%p2337_p5), %s1833_s30, 512  }
 0xa14   : > { %2731 = vsyncadd (%p2337_p5), %s1833_s30, 4294966784  ;;  %s3446_s12 = sld [smem:[#allocation27_spill]]  ;;  %s3449_s30 = smov %s2738_s10 }
 0xa15   : > { %s3447_s27 = sld [smem:[#allocation25_spill]] }
 0xa16   : > { %s3448_s11 = sld [smem:[#allocation28_spill]] }
 0xa1a   : > { %p30_p10 = scmp.ge.s32.totalorder %s3446_s12, 4  }
 0xa1b   : > { %s3450_s10 = smov %s3447_s27 }
 0xa1c   :  { %32 = sbr.rel (!%p30_p10) target bundleno = 18 (0x12), region = 154 }
 0xa21   :  { %1838 = vsyncpa [#allocation3], 1 }
 0xa22   :  { %1840 = vsyncpa [#allocation3 + $0x1], 1 }
 0xa23   :  { %1841 = vsyncpa [#allocation6], 1 }
 0xa24   :  { %1843 = vsyncpa [#allocation6 + $0x1], 1 }
 0xa25   :  { %1844 = vsyncpa [#allocation9], 1 }
 0xa26   :  { %1846 = vsyncpa [#allocation9 + $0x1], 1 }
 0xa27   :  { %1847 = vsyncpa [#allocation12], 1 }
 0xa28   :  { %1848 = vsyncpa [#allocation15], 1 }
 0xa29   :  { %1849 = vsyncpa [#allocation4], 1 }
 0xa2a   :  { %1851 = vsyncpa [#allocation4 + $0x1], 1 }

</bundles_post_ra>
